<compile_context>
chip_gen: v7x
topology: tpu7x:2x2x1
jax: 0.10.0
libtpu: 0.0.40
codegen_flags: <defaults>
</compile_context>

<pallas_src>
import functools

import jax
import jax.numpy as jnp
from jax.experimental import pallas as pl
from jax.experimental.pallas import tpu as pltpu


def _manager_kernel(x_ref, h0_ref, c0_ref, wih_ref, whh_ref, b_ref,
                    wg_ref, bg_ref,
                    goal_ref, hT_ref, cT_ref,
                    xw_sc, hs_sc):
    TB, H = x_ref.shape                 # time-major flattened: rows are (t, b)
    B = h0_ref.shape[0]
    T = TB // B

    # ---- hoisted input projection: one batched MXU matmul for all timesteps,
    # staged time-major into VMEM scratch (keeps it out of vregs across the loop).
    xw_sc[...] = (jnp.dot(x_ref[...].astype(jnp.bfloat16), wih_ref[...],
                          preferred_element_type=jnp.float32)
                  + b_ref[...])                              # (T*B, 4H), bias folded

    # ---- LSTM recurrence (inherently serial over T); fully unrolled.
    # Only h_prev @ W_hh^T remains on the serial chain.  PyTorch gate order is
    # (i, f, g, o); gate math / cell update stay in f32.
    h = h0_ref[...]
    c = c0_ref[...]
    for t in range(T):                                       # static unrolled loop
        gates = xw_sc[t * B:(t + 1) * B, :] + jnp.dot(
            h.astype(jnp.bfloat16), whh_ref[...],
            preferred_element_type=jnp.float32)              # (B, 4H)
        i = jax.nn.sigmoid(gates[:, 0 * H:1 * H])
        f = jax.nn.sigmoid(gates[:, 1 * H:2 * H])
        g = jnp.tanh(gates[:, 2 * H:3 * H])
        o = jax.nn.sigmoid(gates[:, 3 * H:4 * H])
        c = f * c + i * g
        h = o * jnp.tanh(c)
        hs_sc[t * B:(t + 1) * B, :] = h                      # time-major staging (off critical chain)

    # final hidden / cell state written exactly once
    hT_ref[...] = h.astype(hT_ref.dtype)
    cT_ref[...] = c.astype(cT_ref.dtype)

    # ---- goal_fc + F.normalize(p=2, dim=-1), batched over all (t, b),
    # lane-dense (goal width padded to 128 with zero weights/bias).
    hs = hs_sc[...]                                          # (T*B, H) f32
    goal = (jnp.dot(hs.astype(jnp.bfloat16), wg_ref[...],
                    preferred_element_type=jnp.float32)
            + bg_ref[...])                                   # (T*B, Gp)
    ss = jnp.sum(goal * goal, axis=-1, keepdims=True)        # pad columns are exactly 0
    # rsqrt(max(||g||^2, eps^2)) == 1 / max(||g||, 1e-12)  (torch eps semantics)
    inv = jax.lax.rsqrt(jnp.maximum(ss, 1e-24))
    goal_ref[...] = (goal * inv).astype(goal_ref.dtype)


def pack_manager_params(params):
    """One-time parameter packing (transpose / bf16 cast / bias fold / goal pad).

    Hoisted out of the jitted forward so the per-call path only runs the kernel.
    """
    w_ih, w_hh, b_ih, b_hh, w_goal, b_goal = params
    H = w_hh.shape[1]
    G = w_goal.shape[0]
    Gp = max(128, ((G + 127) // 128) * 128)                  # lane-dense goal width

    wih_t = jnp.transpose(w_ih).astype(jnp.bfloat16)         # (H, 4H)
    whh_t = jnp.transpose(w_hh).astype(jnp.bfloat16)         # (H, 4H)
    bias = (b_ih + b_hh).reshape(1, 4 * H).astype(jnp.float32)

    wg_t = jnp.zeros((H, Gp), jnp.bfloat16)
    wg_t = wg_t.at[:, :G].set(jnp.transpose(w_goal).astype(jnp.bfloat16))
    bg = jnp.zeros((1, Gp), jnp.float32).at[0, :G].set(b_goal.astype(jnp.float32))
    return (wih_t, whh_t, bias, wg_t, bg)


def manager_forward(x, hx, packed, *, goal_dim):
    """x: (B, T, H) float32 (batch_first), hx = (h0, c0) each (1, B, H)."""
    wih_t, whh_t, bias, wg_t, bg = packed
    h0, c0 = hx
    B, T, H = x.shape
    Gp = wg_t.shape[1]

    # Time-major layout for the kernel (tiny 8 KiB copy in XLA; removes the
    # per-step sublane-interleave work inside the kernel).
    x_tm = jnp.transpose(x, (1, 0, 2)).reshape(T * B, H)

    vmem = pl.BlockSpec(memory_space=pltpu.MemorySpace.VMEM)

    goal_tm, hT, cT = pl.pallas_call(
        _manager_kernel,
        out_shape=(
            jax.ShapeDtypeStruct((T * B, Gp), jnp.float32),   # time-major, lane-dense goal
            jax.ShapeDtypeStruct((B, H), jnp.float32),        # h_T
            jax.ShapeDtypeStruct((B, H), jnp.float32),        # c_T
        ),
        in_specs=[vmem] * 8,
        out_specs=(vmem, vmem, vmem),
        scratch_shapes=[
            pltpu.VMEM((T * B, 4 * H), jnp.float32),          # staged input projection
            pltpu.VMEM((T * B, H), jnp.float32),              # staged h_t's
        ],
    )(x_tm, h0[0], c0[0], wih_t, whh_t, bias, wg_t, bg)

    goal = jnp.transpose(goal_tm[:, :goal_dim].reshape(T, B, goal_dim), (1, 0, 2))
    return goal, (hT[None], cT[None])


def manager_reference(x, hx, params):
    """Pure-JAX f32 reference (PyTorch LSTM semantics) for verification."""
    w_ih, w_hh, b_ih, b_hh, w_goal, b_goal = params
    h0, c0 = hx
    H = h0.shape[-1]

    def step(carry, x_t):
        h, c = carry
        gates = x_t @ w_ih.T + h @ w_hh.T + b_ih + b_hh
        i = jax.nn.sigmoid(gates[:, 0 * H:1 * H])
        f = jax.nn.sigmoid(gates[:, 1 * H:2 * H])
        g = jnp.tanh(gates[:, 2 * H:3 * H])
        o = jax.nn.sigmoid(gates[:, 3 * H:4 * H])
        c = f * c + i * g
        h = o * jnp.tanh(c)
        return (h, c), h

    (hT, cT), hs = jax.lax.scan(step, (h0[0], c0[0]),
                                jnp.transpose(x, (1, 0, 2)))
    lstm_out = jnp.transpose(hs, (1, 0, 2))
    goal = lstm_out @ w_goal.T + b_goal
    nrm = jnp.sqrt(jnp.sum(goal * goal, axis=-1, keepdims=True))
    goal = goal / jnp.maximum(nrm, 1e-12)
    return goal, (hT[None], cT[None])


if __name__ == "__main__":
    hidden_dim = 128
    goal_dim = 16
    B, T = 2, 8

    key = jax.random.PRNGKey(0)
    ks = jax.random.split(key, 9)
    s = 1.0 / jnp.sqrt(hidden_dim)   # PyTorch default uniform(-1/sqrt(H), 1/sqrt(H))

    w_ih = jax.random.uniform(ks[0], (4 * hidden_dim, hidden_dim), jnp.float32, -s, s)
    w_hh = jax.random.uniform(ks[1], (4 * hidden_dim, hidden_dim), jnp.float32, -s, s)
    b_ih = jax.random.uniform(ks[2], (4 * hidden_dim,), jnp.float32, -s, s)
    b_hh = jax.random.uniform(ks[3], (4 * hidden_dim,), jnp.float32, -s, s)
    w_goal = jax.random.uniform(ks[4], (goal_dim, hidden_dim), jnp.float32, -s, s)
    b_goal = jax.random.uniform(ks[5], (goal_dim,), jnp.float32, -s, s)
    params = (w_ih, w_hh, b_ih, b_hh, w_goal, b_goal)

    x = jax.random.normal(ks[6], (B, T, hidden_dim), jnp.float32)
    h0 = jax.random.normal(ks[7], (1, B, hidden_dim), jnp.float32)
    c0 = jax.random.normal(ks[8], (1, B, hidden_dim), jnp.float32)

    # One-time parameter packing (outside the per-call jitted path).
    packed = jax.block_until_ready(pack_manager_params(params))

    fwd = jax.jit(functools.partial(manager_forward, goal_dim=goal_dim))
    goal, (hT, cT) = fwd(x, (h0, c0), packed)
    jax.block_until_ready((goal, hT, cT))

    goal_r, (hT_r, cT_r) = manager_reference(x, (h0, c0), params)
    # Tolerance loosened vs. pure-f32 because matmul operands are bfloat16
    # (f32 accumulation); expected deviation is ~1e-3..1e-2 at T=8.
    assert goal.shape == (B, T, goal_dim) and hT.shape == (1, B, hidden_dim)
    assert jnp.allclose(goal, goal_r, atol=2e-2, rtol=2e-2)
    assert jnp.allclose(hT, hT_r, atol=2e-2, rtol=2e-2)
    assert jnp.allclose(cT, cT_r, atol=2e-2, rtol=2e-2)

    print("KERNEL_OK")
</pallas_src>

<mosaic_0001>
module attributes {stable_mosaic.version = 11 : i64} {
  func.func @_manager_kernel(%arg0: memref<16x128xf32, #tpu.memory_space<vmem>>, %arg1: memref<2x128xf32, #tpu.memory_space<vmem>>, %arg2: memref<2x128xf32, #tpu.memory_space<vmem>>, %arg3: memref<128x512xbf16, #tpu.memory_space<vmem>>, %arg4: memref<128x512xbf16, #tpu.memory_space<vmem>>, %arg5: memref<1x512xf32, #tpu.memory_space<vmem>>, %arg6: memref<128x128xbf16, #tpu.memory_space<vmem>>, %arg7: memref<1x128xf32, #tpu.memory_space<vmem>>, %arg8: memref<16x128xf32, #tpu.memory_space<vmem>>, %arg9: memref<2x128xf32, #tpu.memory_space<vmem>>, %arg10: memref<2x128xf32, #tpu.memory_space<vmem>>, %arg11: memref<16x512xf32, #tpu.memory_space<vmem>>, %arg12: memref<16x128xf32, #tpu.memory_space<vmem>>) attributes {dimension_semantics = [], scalar_prefetch = 0 : i64, scratch_operands = 2 : i64, tpu.core_type = #tpu.core_type<tc>} {
    %c0 = arith.constant 0 : index
    %c0_0 = arith.constant 0 : index
    %0 = vector.load %arg0[%c0, %c0_0] : memref<16x128xf32, #tpu.memory_space<vmem>>, vector<16x128xf32>
    %1 = arith.truncf %0 : vector<16x128xf32> to vector<16x128xbf16>
    %c0_1 = arith.constant 0 : index
    %c0_2 = arith.constant 0 : index
    %2 = vector.load %arg3[%c0_1, %c0_2] : memref<128x512xbf16, #tpu.memory_space<vmem>>, vector<128x512xbf16>
    %cst = arith.constant dense<0.000000e+00> : vector<16x512xf32>
    %3 = tpu.matmul %1, %2, %cst {dimension_numbers = #tpu.dot_dimension_numbers<[1], [0], [0], [1], [0, 0, 1, 1], [], []>} : vector<16x128xbf16>, vector<128x512xbf16>, vector<16x512xf32> -> vector<16x512xf32>
    %c0_3 = arith.constant 0 : index
    %c0_4 = arith.constant 0 : index
    %4 = vector.load %arg5[%c0_3, %c0_4] : memref<1x512xf32, #tpu.memory_space<vmem>>, vector<1x512xf32>
    %5 = vector.broadcast %4 : vector<1x512xf32> to vector<16x512xf32>
    %6 = arith.addf %3, %5 : vector<16x512xf32>
    %c0_5 = arith.constant 0 : index
    %c0_6 = arith.constant 0 : index
    %7 = vector.load %arg11[%c0_5, %c0_6] : memref<16x512xf32, #tpu.memory_space<vmem>>, vector<16x512xf32>
    tpu.vector_store %arg11[%c0_5, %c0_6], %6 {strides = array<i32>} : memref<16x512xf32, #tpu.memory_space<vmem>>, vector<16x512xf32>,
    %c0_7 = arith.constant 0 : index
    %c0_8 = arith.constant 0 : index
    %8 = vector.load %arg1[%c0_7, %c0_8] : memref<2x128xf32, #tpu.memory_space<vmem>>, vector<2x128xf32>
    %c0_9 = arith.constant 0 : index
    %c0_10 = arith.constant 0 : index
    %9 = vector.load %arg2[%c0_9, %c0_10] : memref<2x128xf32, #tpu.memory_space<vmem>>, vector<2x128xf32>
    %c0_11 = arith.constant 0 : index
    %c0_12 = arith.constant 0 : index
    %10 = vector.load %arg11[%c0_11, %c0_12] : memref<16x512xf32, #tpu.memory_space<vmem>>, vector<2x512xf32>
    %11 = arith.truncf %8 : vector<2x128xf32> to vector<2x128xbf16>
    %c0_13 = arith.constant 0 : index
    %c0_14 = arith.constant 0 : index
    %12 = vector.load %arg4[%c0_13, %c0_14] : memref<128x512xbf16, #tpu.memory_space<vmem>>, vector<128x512xbf16>
    %cst_15 = arith.constant dense<0.000000e+00> : vector<2x512xf32>
    %13 = tpu.matmul %11, %12, %cst_15 {dimension_numbers = #tpu.dot_dimension_numbers<[1], [0], [0], [1], [0, 0, 1, 1], [], []>} : vector<2x128xbf16>, vector<128x512xbf16>, vector<2x512xf32> -> vector<2x512xf32>
    %14 = arith.addf %10, %13 : vector<2x512xf32>
    %15 = vector.extract_strided_slice %14 {offsets = [0, 0], sizes = [2, 128], strides = [1, 1]} : vector<2x512xf32> to vector<2x128xf32>
    %16 = arith.negf %15 : vector<2x128xf32>
    %17 = math.exp %16 : vector<2x128xf32>
    %cst_16 = arith.constant 1.000000e+00 : f32
    %18 = vector.broadcast %cst_16 : f32 to vector<2x128xf32>
    %19 = arith.addf %18, %17 : vector<2x128xf32>
    %20 = arith.divf %18, %19 : vector<2x128xf32>
    %21 = vector.extract_strided_slice %14 {offsets = [0, 128], sizes = [2, 128], strides = [1, 1]} : vector<2x512xf32> to vector<2x128xf32>
    %22 = arith.negf %21 : vector<2x128xf32>
    %23 = math.exp %22 : vector<2x128xf32>
    %cst_17 = arith.constant 1.000000e+00 : f32
    %24 = vector.broadcast %cst_17 : f32 to vector<2x128xf32>
    %25 = arith.addf %24, %23 : vector<2x128xf32>
    %26 = arith.divf %24, %25 : vector<2x128xf32>
    %27 = vector.extract_strided_slice %14 {offsets = [0, 256], sizes = [2, 128], strides = [1, 1]} : vector<2x512xf32> to vector<2x128xf32>
    %28 = math.tanh %27 : vector<2x128xf32>
    %29 = vector.extract_strided_slice %14 {offsets = [0, 384], sizes = [2, 128], strides = [1, 1]} : vector<2x512xf32> to vector<2x128xf32>
    %30 = arith.negf %29 : vector<2x128xf32>
    %31 = math.exp %30 : vector<2x128xf32>
    %cst_18 = arith.constant 1.000000e+00 : f32
    %32 = vector.broadcast %cst_18 : f32 to vector<2x128xf32>
    %33 = arith.addf %32, %31 : vector<2x128xf32>
    %34 = arith.divf %32, %33 : vector<2x128xf32>
    %35 = arith.mulf %26, %9 : vector<2x128xf32>
    %36 = arith.mulf %20, %28 : vector<2x128xf32>
    %37 = arith.addf %35, %36 : vector<2x128xf32>
    %38 = math.tanh %37 : vector<2x128xf32>
    %39 = arith.mulf %34, %38 : vector<2x128xf32>
    %c0_19 = arith.constant 0 : index
    %c0_20 = arith.constant 0 : index
    %40 = vector.load %arg12[%c0_19, %c0_20] : memref<16x128xf32, #tpu.memory_space<vmem>>, vector<2x128xf32>
    tpu.vector_store %arg12[%c0_19, %c0_20], %39 {strides = array<i32>} : memref<16x128xf32, #tpu.memory_space<vmem>>, vector<2x128xf32>,
    %c2 = arith.constant 2 : index
    %c0_21 = arith.constant 0 : index
    %41 = vector.load %arg11[%c2, %c0_21] : memref<16x512xf32, #tpu.memory_space<vmem>>, vector<2x512xf32>
    %42 = arith.truncf %39 : vector<2x128xf32> to vector<2x128xbf16>
    %c0_22 = arith.constant 0 : index
    %c0_23 = arith.constant 0 : index
    %43 = vector.load %arg4[%c0_22, %c0_23] : memref<128x512xbf16, #tpu.memory_space<vmem>>, vector<128x512xbf16>
    %cst_24 = arith.constant dense<0.000000e+00> : vector<2x512xf32>
    %44 = tpu.matmul %42, %43, %cst_24 {dimension_numbers = #tpu.dot_dimension_numbers<[1], [0], [0], [1], [0, 0, 1, 1], [], []>} : vector<2x128xbf16>, vector<128x512xbf16>, vector<2x512xf32> -> vector<2x512xf32>
    %45 = arith.addf %41, %44 : vector<2x512xf32>
    %46 = vector.extract_strided_slice %45 {offsets = [0, 0], sizes = [2, 128], strides = [1, 1]} : vector<2x512xf32> to vector<2x128xf32>
    %47 = arith.negf %46 : vector<2x128xf32>
    %48 = math.exp %47 : vector<2x128xf32>
    %cst_25 = arith.constant 1.000000e+00 : f32
    %49 = vector.broadcast %cst_25 : f32 to vector<2x128xf32>
    %50 = arith.addf %49, %48 : vector<2x128xf32>
    %51 = arith.divf %49, %50 : vector<2x128xf32>
    %52 = vector.extract_strided_slice %45 {offsets = [0, 128], sizes = [2, 128], strides = [1, 1]} : vector<2x512xf32> to vector<2x128xf32>
    %53 = arith.negf %52 : vector<2x128xf32>
    %54 = math.exp %53 : vector<2x128xf32>
    %cst_26 = arith.constant 1.000000e+00 : f32
    %55 = vector.broadcast %cst_26 : f32 to vector<2x128xf32>
    %56 = arith.addf %55, %54 : vector<2x128xf32>
    %57 = arith.divf %55, %56 : vector<2x128xf32>
    %58 = vector.extract_strided_slice %45 {offsets = [0, 256], sizes = [2, 128], strides = [1, 1]} : vector<2x512xf32> to vector<2x128xf32>
    %59 = math.tanh %58 : vector<2x128xf32>
    %60 = vector.extract_strided_slice %45 {offsets = [0, 384], sizes = [2, 128], strides = [1, 1]} : vector<2x512xf32> to vector<2x128xf32>
    %61 = arith.negf %60 : vector<2x128xf32>
    %62 = math.exp %61 : vector<2x128xf32>
    %cst_27 = arith.constant 1.000000e+00 : f32
    %63 = vector.broadcast %cst_27 : f32 to vector<2x128xf32>
    %64 = arith.addf %63, %62 : vector<2x128xf32>
    %65 = arith.divf %63, %64 : vector<2x128xf32>
    %66 = arith.mulf %57, %37 : vector<2x128xf32>
    %67 = arith.mulf %51, %59 : vector<2x128xf32>
    %68 = arith.addf %66, %67 : vector<2x128xf32>
    %69 = math.tanh %68 : vector<2x128xf32>
    %70 = arith.mulf %65, %69 : vector<2x128xf32>
    %c2_28 = arith.constant 2 : index
    %c0_29 = arith.constant 0 : index
    %71 = vector.load %arg12[%c2_28, %c0_29] : memref<16x128xf32, #tpu.memory_space<vmem>>, vector<2x128xf32>
    tpu.vector_store %arg12[%c2_28, %c0_29], %70 {strides = array<i32>} : memref<16x128xf32, #tpu.memory_space<vmem>>, vector<2x128xf32>,
    %c4 = arith.constant 4 : index
    %c0_30 = arith.constant 0 : index
    %72 = vector.load %arg11[%c4, %c0_30] : memref<16x512xf32, #tpu.memory_space<vmem>>, vector<2x512xf32>
    %73 = arith.truncf %70 : vector<2x128xf32> to vector<2x128xbf16>
    %c0_31 = arith.constant 0 : index
    %c0_32 = arith.constant 0 : index
    %74 = vector.load %arg4[%c0_31, %c0_32] : memref<128x512xbf16, #tpu.memory_space<vmem>>, vector<128x512xbf16>
    %cst_33 = arith.constant dense<0.000000e+00> : vector<2x512xf32>
    %75 = tpu.matmul %73, %74, %cst_33 {dimension_numbers = #tpu.dot_dimension_numbers<[1], [0], [0], [1], [0, 0, 1, 1], [], []>} : vector<2x128xbf16>, vector<128x512xbf16>, vector<2x512xf32> -> vector<2x512xf32>
    %76 = arith.addf %72, %75 : vector<2x512xf32>
    %77 = vector.extract_strided_slice %76 {offsets = [0, 0], sizes = [2, 128], strides = [1, 1]} : vector<2x512xf32> to vector<2x128xf32>
    %78 = arith.negf %77 : vector<2x128xf32>
    %79 = math.exp %78 : vector<2x128xf32>
    %cst_34 = arith.constant 1.000000e+00 : f32
    %80 = vector.broadcast %cst_34 : f32 to vector<2x128xf32>
    %81 = arith.addf %80, %79 : vector<2x128xf32>
    %82 = arith.divf %80, %81 : vector<2x128xf32>
    %83 = vector.extract_strided_slice %76 {offsets = [0, 128], sizes = [2, 128], strides = [1, 1]} : vector<2x512xf32> to vector<2x128xf32>
    %84 = arith.negf %83 : vector<2x128xf32>
    %85 = math.exp %84 : vector<2x128xf32>
    %cst_35 = arith.constant 1.000000e+00 : f32
    %86 = vector.broadcast %cst_35 : f32 to vector<2x128xf32>
    %87 = arith.addf %86, %85 : vector<2x128xf32>
    %88 = arith.divf %86, %87 : vector<2x128xf32>
    %89 = vector.extract_strided_slice %76 {offsets = [0, 256], sizes = [2, 128], strides = [1, 1]} : vector<2x512xf32> to vector<2x128xf32>
    %90 = math.tanh %89 : vector<2x128xf32>
    %91 = vector.extract_strided_slice %76 {offsets = [0, 384], sizes = [2, 128], strides = [1, 1]} : vector<2x512xf32> to vector<2x128xf32>
    %92 = arith.negf %91 : vector<2x128xf32>
    %93 = math.exp %92 : vector<2x128xf32>
    %cst_36 = arith.constant 1.000000e+00 : f32
    %94 = vector.broadcast %cst_36 : f32 to vector<2x128xf32>
    %95 = arith.addf %94, %93 : vector<2x128xf32>
    %96 = arith.divf %94, %95 : vector<2x128xf32>
    %97 = arith.mulf %88, %68 : vector<2x128xf32>
    %98 = arith.mulf %82, %90 : vector<2x128xf32>
    %99 = arith.addf %97, %98 : vector<2x128xf32>
    %100 = math.tanh %99 : vector<2x128xf32>
    %101 = arith.mulf %96, %100 : vector<2x128xf32>
    %c4_37 = arith.constant 4 : index
    %c0_38 = arith.constant 0 : index
    %102 = vector.load %arg12[%c4_37, %c0_38] : memref<16x128xf32, #tpu.memory_space<vmem>>, vector<2x128xf32>
    tpu.vector_store %arg12[%c4_37, %c0_38], %101 {strides = array<i32>} : memref<16x128xf32, #tpu.memory_space<vmem>>, vector<2x128xf32>,
    %c6 = arith.constant 6 : index
    %c0_39 = arith.constant 0 : index
    %103 = vector.load %arg11[%c6, %c0_39] : memref<16x512xf32, #tpu.memory_space<vmem>>, vector<2x512xf32>
    %104 = arith.truncf %101 : vector<2x128xf32> to vector<2x128xbf16>
    %c0_40 = arith.constant 0 : index
    %c0_41 = arith.constant 0 : index
    %105 = vector.load %arg4[%c0_40, %c0_41] : memref<128x512xbf16, #tpu.memory_space<vmem>>, vector<128x512xbf16>
    %cst_42 = arith.constant dense<0.000000e+00> : vector<2x512xf32>
    %106 = tpu.matmul %104, %105, %cst_42 {dimension_numbers = #tpu.dot_dimension_numbers<[1], [0], [0], [1], [0, 0, 1, 1], [], []>} : vector<2x128xbf16>, vector<128x512xbf16>, vector<2x512xf32> -> vector<2x512xf32>
    %107 = arith.addf %103, %106 : vector<2x512xf32>
    %108 = vector.extract_strided_slice %107 {offsets = [0, 0], sizes = [2, 128], strides = [1, 1]} : vector<2x512xf32> to vector<2x128xf32>
    %109 = arith.negf %108 : vector<2x128xf32>
    %110 = math.exp %109 : vector<2x128xf32>
    %cst_43 = arith.constant 1.000000e+00 : f32
    %111 = vector.broadcast %cst_43 : f32 to vector<2x128xf32>
    %112 = arith.addf %111, %110 : vector<2x128xf32>
    %113 = arith.divf %111, %112 : vector<2x128xf32>
    %114 = vector.extract_strided_slice %107 {offsets = [0, 128], sizes = [2, 128], strides = [1, 1]} : vector<2x512xf32> to vector<2x128xf32>
    %115 = arith.negf %114 : vector<2x128xf32>
    %116 = math.exp %115 : vector<2x128xf32>
    %cst_44 = arith.constant 1.000000e+00 : f32
    %117 = vector.broadcast %cst_44 : f32 to vector<2x128xf32>
    %118 = arith.addf %117, %116 : vector<2x128xf32>
    %119 = arith.divf %117, %118 : vector<2x128xf32>
    %120 = vector.extract_strided_slice %107 {offsets = [0, 256], sizes = [2, 128], strides = [1, 1]} : vector<2x512xf32> to vector<2x128xf32>
    %121 = math.tanh %120 : vector<2x128xf32>
    %122 = vector.extract_strided_slice %107 {offsets = [0, 384], sizes = [2, 128], strides = [1, 1]} : vector<2x512xf32> to vector<2x128xf32>
    %123 = arith.negf %122 : vector<2x128xf32>
    %124 = math.exp %123 : vector<2x128xf32>
    %cst_45 = arith.constant 1.000000e+00 : f32
    %125 = vector.broadcast %cst_45 : f32 to vector<2x128xf32>
    %126 = arith.addf %125, %124 : vector<2x128xf32>
    %127 = arith.divf %125, %126 : vector<2x128xf32>
    %128 = arith.mulf %119, %99 : vector<2x128xf32>
    %129 = arith.mulf %113, %121 : vector<2x128xf32>
    %130 = arith.addf %128, %129 : vector<2x128xf32>
    %131 = math.tanh %130 : vector<2x128xf32>
    %132 = arith.mulf %127, %131 : vector<2x128xf32>
    %c6_46 = arith.constant 6 : index
    %c0_47 = arith.constant 0 : index
    %133 = vector.load %arg12[%c6_46, %c0_47] : memref<16x128xf32, #tpu.memory_space<vmem>>, vector<2x128xf32>
    tpu.vector_store %arg12[%c6_46, %c0_47], %132 {strides = array<i32>} : memref<16x128xf32, #tpu.memory_space<vmem>>, vector<2x128xf32>,
    %c8 = arith.constant 8 : index
    %c0_48 = arith.constant 0 : index
    %134 = vector.load %arg11[%c8, %c0_48] : memref<16x512xf32, #tpu.memory_space<vmem>>, vector<2x512xf32>
    %135 = arith.truncf %132 : vector<2x128xf32> to vector<2x128xbf16>
    %c0_49 = arith.constant 0 : index
    %c0_50 = arith.constant 0 : index
    %136 = vector.load %arg4[%c0_49, %c0_50] : memref<128x512xbf16, #tpu.memory_space<vmem>>, vector<128x512xbf16>
    %cst_51 = arith.constant dense<0.000000e+00> : vector<2x512xf32>
    %137 = tpu.matmul %135, %136, %cst_51 {dimension_numbers = #tpu.dot_dimension_numbers<[1], [0], [0], [1], [0, 0, 1, 1], [], []>} : vector<2x128xbf16>, vector<128x512xbf16>, vector<2x512xf32> -> vector<2x512xf32>
    %138 = arith.addf %134, %137 : vector<2x512xf32>
    %139 = vector.extract_strided_slice %138 {offsets = [0, 0], sizes = [2, 128], strides = [1, 1]} : vector<2x512xf32> to vector<2x128xf32>
    %140 = arith.negf %139 : vector<2x128xf32>
    %141 = math.exp %140 : vector<2x128xf32>
    %cst_52 = arith.constant 1.000000e+00 : f32
    %142 = vector.broadcast %cst_52 : f32 to vector<2x128xf32>
    %143 = arith.addf %142, %141 : vector<2x128xf32>
    %144 = arith.divf %142, %143 : vector<2x128xf32>
    %145 = vector.extract_strided_slice %138 {offsets = [0, 128], sizes = [2, 128], strides = [1, 1]} : vector<2x512xf32> to vector<2x128xf32>
    %146 = arith.negf %145 : vector<2x128xf32>
    %147 = math.exp %146 : vector<2x128xf32>
    %cst_53 = arith.constant 1.000000e+00 : f32
    %148 = vector.broadcast %cst_53 : f32 to vector<2x128xf32>
    %149 = arith.addf %148, %147 : vector<2x128xf32>
    %150 = arith.divf %148, %149 : vector<2x128xf32>
    %151 = vector.extract_strided_slice %138 {offsets = [0, 256], sizes = [2, 128], strides = [1, 1]} : vector<2x512xf32> to vector<2x128xf32>
    %152 = math.tanh %151 : vector<2x128xf32>
    %153 = vector.extract_strided_slice %138 {offsets = [0, 384], sizes = [2, 128], strides = [1, 1]} : vector<2x512xf32> to vector<2x128xf32>
    %154 = arith.negf %153 : vector<2x128xf32>
    %155 = math.exp %154 : vector<2x128xf32>
    %cst_54 = arith.constant 1.000000e+00 : f32
    %156 = vector.broadcast %cst_54 : f32 to vector<2x128xf32>
    %157 = arith.addf %156, %155 : vector<2x128xf32>
    %158 = arith.divf %156, %157 : vector<2x128xf32>
    %159 = arith.mulf %150, %130 : vector<2x128xf32>
    %160 = arith.mulf %144, %152 : vector<2x128xf32>
    %161 = arith.addf %159, %160 : vector<2x128xf32>
    %162 = math.tanh %161 : vector<2x128xf32>
    %163 = arith.mulf %158, %162 : vector<2x128xf32>
    %c8_55 = arith.constant 8 : index
    %c0_56 = arith.constant 0 : index
    %164 = vector.load %arg12[%c8_55, %c0_56] : memref<16x128xf32, #tpu.memory_space<vmem>>, vector<2x128xf32>
    tpu.vector_store %arg12[%c8_55, %c0_56], %163 {strides = array<i32>} : memref<16x128xf32, #tpu.memory_space<vmem>>, vector<2x128xf32>,
    %c10 = arith.constant 10 : index
    %c0_57 = arith.constant 0 : index
    %165 = vector.load %arg11[%c10, %c0_57] : memref<16x512xf32, #tpu.memory_space<vmem>>, vector<2x512xf32>
    %166 = arith.truncf %163 : vector<2x128xf32> to vector<2x128xbf16>
    %c0_58 = arith.constant 0 : index
    %c0_59 = arith.constant 0 : index
    %167 = vector.load %arg4[%c0_58, %c0_59] : memref<128x512xbf16, #tpu.memory_space<vmem>>, vector<128x512xbf16>
    %cst_60 = arith.constant dense<0.000000e+00> : vector<2x512xf32>
    %168 = tpu.matmul %166, %167, %cst_60 {dimension_numbers = #tpu.dot_dimension_numbers<[1], [0], [0], [1], [0, 0, 1, 1], [], []>} : vector<2x128xbf16>, vector<128x512xbf16>, vector<2x512xf32> -> vector<2x512xf32>
    %169 = arith.addf %165, %168 : vector<2x512xf32>
    %170 = vector.extract_strided_slice %169 {offsets = [0, 0], sizes = [2, 128], strides = [1, 1]} : vector<2x512xf32> to vector<2x128xf32>
    %171 = arith.negf %170 : vector<2x128xf32>
    %172 = math.exp %171 : vector<2x128xf32>
    %cst_61 = arith.constant 1.000000e+00 : f32
    %173 = vector.broadcast %cst_61 : f32 to vector<2x128xf32>
    %174 = arith.addf %173, %172 : vector<2x128xf32>
    %175 = arith.divf %173, %174 : vector<2x128xf32>
    %176 = vector.extract_strided_slice %169 {offsets = [0, 128], sizes = [2, 128], strides = [1, 1]} : vector<2x512xf32> to vector<2x128xf32>
    %177 = arith.negf %176 : vector<2x128xf32>
    %178 = math.exp %177 : vector<2x128xf32>
    %cst_62 = arith.constant 1.000000e+00 : f32
    %179 = vector.broadcast %cst_62 : f32 to vector<2x128xf32>
    %180 = arith.addf %179, %178 : vector<2x128xf32>
    %181 = arith.divf %179, %180 : vector<2x128xf32>
    %182 = vector.extract_strided_slice %169 {offsets = [0, 256], sizes = [2, 128], strides = [1, 1]} : vector<2x512xf32> to vector<2x128xf32>
    %183 = math.tanh %182 : vector<2x128xf32>
    %184 = vector.extract_strided_slice %169 {offsets = [0, 384], sizes = [2, 128], strides = [1, 1]} : vector<2x512xf32> to vector<2x128xf32>
    %185 = arith.negf %184 : vector<2x128xf32>
    %186 = math.exp %185 : vector<2x128xf32>
    %cst_63 = arith.constant 1.000000e+00 : f32
    %187 = vector.broadcast %cst_63 : f32 to vector<2x128xf32>
    %188 = arith.addf %187, %186 : vector<2x128xf32>
    %189 = arith.divf %187, %188 : vector<2x128xf32>
    %190 = arith.mulf %181, %161 : vector<2x128xf32>
    %191 = arith.mulf %175, %183 : vector<2x128xf32>
    %192 = arith.addf %190, %191 : vector<2x128xf32>
    %193 = math.tanh %192 : vector<2x128xf32>
    %194 = arith.mulf %189, %193 : vector<2x128xf32>
    %c10_64 = arith.constant 10 : index
    %c0_65 = arith.constant 0 : index
    %195 = vector.load %arg12[%c10_64, %c0_65] : memref<16x128xf32, #tpu.memory_space<vmem>>, vector<2x128xf32>
    tpu.vector_store %arg12[%c10_64, %c0_65], %194 {strides = array<i32>} : memref<16x128xf32, #tpu.memory_space<vmem>>, vector<2x128xf32>,
    %c12 = arith.constant 12 : index
    %c0_66 = arith.constant 0 : index
    %196 = vector.load %arg11[%c12, %c0_66] : memref<16x512xf32, #tpu.memory_space<vmem>>, vector<2x512xf32>
    %197 = arith.truncf %194 : vector<2x128xf32> to vector<2x128xbf16>
    %c0_67 = arith.constant 0 : index
    %c0_68 = arith.constant 0 : index
    %198 = vector.load %arg4[%c0_67, %c0_68] : memref<128x512xbf16, #tpu.memory_space<vmem>>, vector<128x512xbf16>
    %cst_69 = arith.constant dense<0.000000e+00> : vector<2x512xf32>
    %199 = tpu.matmul %197, %198, %cst_69 {dimension_numbers = #tpu.dot_dimension_numbers<[1], [0], [0], [1], [0, 0, 1, 1], [], []>} : vector<2x128xbf16>, vector<128x512xbf16>, vector<2x512xf32> -> vector<2x512xf32>
    %200 = arith.addf %196, %199 : vector<2x512xf32>
    %201 = vector.extract_strided_slice %200 {offsets = [0, 0], sizes = [2, 128], strides = [1, 1]} : vector<2x512xf32> to vector<2x128xf32>
    %202 = arith.negf %201 : vector<2x128xf32>
    %203 = math.exp %202 : vector<2x128xf32>
    %cst_70 = arith.constant 1.000000e+00 : f32
    %204 = vector.broadcast %cst_70 : f32 to vector<2x128xf32>
    %205 = arith.addf %204, %203 : vector<2x128xf32>
    %206 = arith.divf %204, %205 : vector<2x128xf32>
    %207 = vector.extract_strided_slice %200 {offsets = [0, 128], sizes = [2, 128], strides = [1, 1]} : vector<2x512xf32> to vector<2x128xf32>
    %208 = arith.negf %207 : vector<2x128xf32>
    %209 = math.exp %208 : vector<2x128xf32>
    %cst_71 = arith.constant 1.000000e+00 : f32
    %210 = vector.broadcast %cst_71 : f32 to vector<2x128xf32>
    %211 = arith.addf %210, %209 : vector<2x128xf32>
    %212 = arith.divf %210, %211 : vector<2x128xf32>
    %213 = vector.extract_strided_slice %200 {offsets = [0, 256], sizes = [2, 128], strides = [1, 1]} : vector<2x512xf32> to vector<2x128xf32>
    %214 = math.tanh %213 : vector<2x128xf32>
    %215 = vector.extract_strided_slice %200 {offsets = [0, 384], sizes = [2, 128], strides = [1, 1]} : vector<2x512xf32> to vector<2x128xf32>
    %216 = arith.negf %215 : vector<2x128xf32>
    %217 = math.exp %216 : vector<2x128xf32>
    %cst_72 = arith.constant 1.000000e+00 : f32
    %218 = vector.broadcast %cst_72 : f32 to vector<2x128xf32>
    %219 = arith.addf %218, %217 : vector<2x128xf32>
    %220 = arith.divf %218, %219 : vector<2x128xf32>
    %221 = arith.mulf %212, %192 : vector<2x128xf32>
    %222 = arith.mulf %206, %214 : vector<2x128xf32>
    %223 = arith.addf %221, %222 : vector<2x128xf32>
    %224 = math.tanh %223 : vector<2x128xf32>
    %225 = arith.mulf %220, %224 : vector<2x128xf32>
    %c12_73 = arith.constant 12 : index
    %c0_74 = arith.constant 0 : index
    %226 = vector.load %arg12[%c12_73, %c0_74] : memref<16x128xf32, #tpu.memory_space<vmem>>, vector<2x128xf32>
    tpu.vector_store %arg12[%c12_73, %c0_74], %225 {strides = array<i32>} : memref<16x128xf32, #tpu.memory_space<vmem>>, vector<2x128xf32>,
    %c14 = arith.constant 14 : index
    %c0_75 = arith.constant 0 : index
    %227 = vector.load %arg11[%c14, %c0_75] : memref<16x512xf32, #tpu.memory_space<vmem>>, vector<2x512xf32>
    %228 = arith.truncf %225 : vector<2x128xf32> to vector<2x128xbf16>
    %c0_76 = arith.constant 0 : index
    %c0_77 = arith.constant 0 : index
    %229 = vector.load %arg4[%c0_76, %c0_77] : memref<128x512xbf16, #tpu.memory_space<vmem>>, vector<128x512xbf16>
    %cst_78 = arith.constant dense<0.000000e+00> : vector<2x512xf32>
    %230 = tpu.matmul %228, %229, %cst_78 {dimension_numbers = #tpu.dot_dimension_numbers<[1], [0], [0], [1], [0, 0, 1, 1], [], []>} : vector<2x128xbf16>, vector<128x512xbf16>, vector<2x512xf32> -> vector<2x512xf32>
    %231 = arith.addf %227, %230 : vector<2x512xf32>
    %232 = vector.extract_strided_slice %231 {offsets = [0, 0], sizes = [2, 128], strides = [1, 1]} : vector<2x512xf32> to vector<2x128xf32>
    %233 = arith.negf %232 : vector<2x128xf32>
    %234 = math.exp %233 : vector<2x128xf32>
    %cst_79 = arith.constant 1.000000e+00 : f32
    %235 = vector.broadcast %cst_79 : f32 to vector<2x128xf32>
    %236 = arith.addf %235, %234 : vector<2x128xf32>
    %237 = arith.divf %235, %236 : vector<2x128xf32>
    %238 = vector.extract_strided_slice %231 {offsets = [0, 128], sizes = [2, 128], strides = [1, 1]} : vector<2x512xf32> to vector<2x128xf32>
    %239 = arith.negf %238 : vector<2x128xf32>
    %240 = math.exp %239 : vector<2x128xf32>
    %cst_80 = arith.constant 1.000000e+00 : f32
    %241 = vector.broadcast %cst_80 : f32 to vector<2x128xf32>
    %242 = arith.addf %241, %240 : vector<2x128xf32>
    %243 = arith.divf %241, %242 : vector<2x128xf32>
    %244 = vector.extract_strided_slice %231 {offsets = [0, 256], sizes = [2, 128], strides = [1, 1]} : vector<2x512xf32> to vector<2x128xf32>
    %245 = math.tanh %244 : vector<2x128xf32>
    %246 = vector.extract_strided_slice %231 {offsets = [0, 384], sizes = [2, 128], strides = [1, 1]} : vector<2x512xf32> to vector<2x128xf32>
    %247 = arith.negf %246 : vector<2x128xf32>
    %248 = math.exp %247 : vector<2x128xf32>
    %cst_81 = arith.constant 1.000000e+00 : f32
    %249 = vector.broadcast %cst_81 : f32 to vector<2x128xf32>
    %250 = arith.addf %249, %248 : vector<2x128xf32>
    %251 = arith.divf %249, %250 : vector<2x128xf32>
    %252 = arith.mulf %243, %223 : vector<2x128xf32>
    %253 = arith.mulf %237, %245 : vector<2x128xf32>
    %254 = arith.addf %252, %253 : vector<2x128xf32>
    %255 = math.tanh %254 : vector<2x128xf32>
    %256 = arith.mulf %251, %255 : vector<2x128xf32>
    %c14_82 = arith.constant 14 : index
    %c0_83 = arith.constant 0 : index
    %257 = vector.load %arg12[%c14_82, %c0_83] : memref<16x128xf32, #tpu.memory_space<vmem>>, vector<2x128xf32>
    tpu.vector_store %arg12[%c14_82, %c0_83], %256 {strides = array<i32>} : memref<16x128xf32, #tpu.memory_space<vmem>>, vector<2x128xf32>,
    %c0_84 = arith.constant 0 : index
    %c0_85 = arith.constant 0 : index
    %258 = vector.load %arg9[%c0_84, %c0_85] : memref<2x128xf32, #tpu.memory_space<vmem>>, vector<2x128xf32>
    tpu.vector_store %arg9[%c0_84, %c0_85], %256 {strides = array<i32>} : memref<2x128xf32, #tpu.memory_space<vmem>>, vector<2x128xf32>,
    %c0_86 = arith.constant 0 : index
    %c0_87 = arith.constant 0 : index
    %259 = vector.load %arg10[%c0_86, %c0_87] : memref<2x128xf32, #tpu.memory_space<vmem>>, vector<2x128xf32>
    tpu.vector_store %arg10[%c0_86, %c0_87], %254 {strides = array<i32>} : memref<2x128xf32, #tpu.memory_space<vmem>>, vector<2x128xf32>,
    %c0_88 = arith.constant 0 : index
    %c0_89 = arith.constant 0 : index
    %260 = vector.load %arg12[%c0_88, %c0_89] : memref<16x128xf32, #tpu.memory_space<vmem>>, vector<16x128xf32>
    %261 = arith.truncf %260 : vector<16x128xf32> to vector<16x128xbf16>
    %c0_90 = arith.constant 0 : index
    %c0_91 = arith.constant 0 : index
    %262 = vector.load %arg6[%c0_90, %c0_91] : memref<128x128xbf16, #tpu.memory_space<vmem>>, vector<128x128xbf16>
    %cst_92 = arith.constant dense<0.000000e+00> : vector<16x128xf32>
    %263 = tpu.matmul %261, %262, %cst_92 {dimension_numbers = #tpu.dot_dimension_numbers<[1], [0], [0], [1], [0, 0, 1, 1], [], []>} : vector<16x128xbf16>, vector<128x128xbf16>, vector<16x128xf32> -> vector<16x128xf32>
    %c0_93 = arith.constant 0 : index
    %c0_94 = arith.constant 0 : index
    %264 = vector.load %arg7[%c0_93, %c0_94] : memref<1x128xf32, #tpu.memory_space<vmem>>, vector<1x128xf32>
    %265 = vector.broadcast %264 : vector<1x128xf32> to vector<16x128xf32>
    %266 = arith.addf %263, %265 : vector<16x128xf32>
    %267 = arith.mulf %266, %266 : vector<16x128xf32>
    %cst_95 = arith.constant dense<0.000000e+00> : vector<16xf32>
    %268 = vector.multi_reduction <add>, %267, %cst_95 [1] : vector<16x128xf32> to vector<16xf32>
    %269 = vector.shape_cast %268 : vector<16xf32> to vector<16x1xf32>
    %cst_96 = arith.constant 1.000000e-24 : f32
    %270 = vector.broadcast %cst_96 : f32 to vector<16x1xf32>
    %271 = arith.maximumf %269, %270 : vector<16x1xf32>
    %272 = math.rsqrt %271 : vector<16x1xf32>
    %273 = vector.broadcast %272 : vector<16x1xf32> to vector<16x128xf32>
    %274 = arith.mulf %266, %273 : vector<16x128xf32>
    %c0_97 = arith.constant 0 : index
    %c0_98 = arith.constant 0 : index
    %275 = vector.load %arg8[%c0_97, %c0_98] : memref<16x128xf32, #tpu.memory_space<vmem>>, vector<16x128xf32>
    tpu.vector_store %arg8[%c0_97, %c0_98], %274 {strides = array<i32>} : memref<16x128xf32, #tpu.memory_space<vmem>>, vector<16x128xf32>,
    return
  }
}

</mosaic_0001>

<bundles_post_ra>
// kernel: manager_forward.1
= control target key start
LH: loop header
LB: loop body
LE: loop exit
PB: predicated region body
PF: predicated region fallthrough
CT: control target
= control target key end

     0   :  { %16 = vsyncpa [#allocation5], 0  ;;  %s4534_s0 = inlined_call_operand.vmem [shape: f32[16,128], index: 0, kind: input, shape index: {}]   ;;  %s4535_s1 = inlined_call_operand.hbm [shape: f32[2,128], index: 1, kind: input, shape index: {}]   ;;  %s4536_s2 = inlined_call_operand.hbm [shape: f32[2,128], index: 2, kind: input, shape index: {}]   ;;  %s4537_s3 = inlined_call_operand.hbm [shape: bf16[128,512], index: 3, kind: input, shape index: {}]   ;;  %s4538_s4 = inlined_call_operand.hbm [shape: bf16[128,512], index: 4, kind: input, shape index: {}]   ;;  %s4539_s5 = inlined_call_operand.vmem [shape: f32[1,512], index: 5, kind: input, shape index: {}]   ;;  %s4540_s6 = inlined_call_operand.vmem [shape: bf16[128,128], index: 6, kind: input, shape index: {}]   ;;  %s4541_s7 = inlined_call_operand.vmem [shape: f32[1,128], index: 7, kind: input, shape index: {}]   ;;  %s4542_s8 = inlined_call_operand.vmem [shape: f32[16,128], index: 8, kind: output, shape index: {0}]   ;;  %s4543_s9 = inlined_call_operand.hbm [shape: f32[2,128], index: 9, kind: output, shape index: {1}]   ;;  %s4544_s10 = inlined_call_operand.hbm [shape: f32[2,128], index: 10, kind: output, shape index: {2}]  }
   0x1   :  { %17 = vsyncpa [#allocation8], 0 }
   0x2   :  { %18 = vsyncpa [#allocation11], 0 }
   0x3   :  { %19 = vsyncpa [#allocation6], 0 }
   0x4   :  { %20 = vsyncpa [#allocation14], 0  ;;  %s3924_s13 = smov [#allocation7]   ;;  %s3925_s15 = smov [#allocation4]  }
   0x5   :  { %s39_s14 = sshll.u32 %s3924_s13, 4  ;;  %s29_s16 = sshll.u32 %s3925_s15, 4  ;;  %s40_s14 = int_to_ptr.vmem [resolvable:$true] %s39_s14  ;;  %s30_s16 = int_to_ptr.vmem [resolvable:$true] %s29_s16 }
   0x6   :  { %s3782_s19 = scalar_lea.hbm %s4536_s2, 32 }
   0x7   :  { %p3783_p0 = scmp.ne.s32.totalorder %s4536_s2, %s3782_s19  ;;  %p3786_p1 = scmp.lt.u32.totalorder %s3782_s19, %s4536_s2 }
   0x9   :  { %p3788_p2 = pnand %p3786_p1, %p3783_p0 }
   0xb   :  { %3791 = shalt.err (!%p3788_p2)
}
   0xc   :  { %s3792_s24 = scalar_lea.vmem %s40_s14, 32  ;;  %p3797_p4 = scmp.lt.s32.totalorder %s40_s14, %s40_s14 }
   0xd   :  { %p3793_p3 = scmp.ne.s32.totalorder %s40_s14, %s3792_s24  ;;  %p3798_p5 = scmp.lt.s32.totalorder %s3792_s24, %s3792_s24 }
   0xf   :  { %p3799_p6 = por %p3798_p5, %p3797_p4 }
  0x11   :  { %p3800_p7 = pnand %p3799_p6, %p3793_p3 }
  0x13   :  { %3803 = shalt.err (!%p3800_p7)
}
  0x14   :  { %42 = dma.hbm_to_vmem [thread:$0]  %s4536_s2, 32, %s40_s14, [#allocation8]  }
  0x15   :  { %s3804_s29 = scalar_lea.hbm %s4535_s1, 32 }
  0x16   :  { %p3805_p8 = scmp.ne.s32.totalorder %s4535_s1, %s3804_s29  ;;  %p3808_p9 = scmp.lt.u32.totalorder %s3804_s29, %s4535_s1 }
  0x18   :  { %p3810_p10 = pnand %p3808_p9, %p3805_p8 }
  0x1a   :  { %3813 = shalt.err (!%p3810_p10)
}
  0x1b   :  { %s3814_s15 = scalar_lea.vmem %s30_s16, 32  ;;  %p3819_p12 = scmp.lt.s32.totalorder %s30_s16, %s30_s16 }
  0x1c   :  { %p3815_p11 = scmp.ne.s32.totalorder %s30_s16, %s3814_s15  ;;  %p3820_p13 = scmp.lt.s32.totalorder %s3814_s15, %s3814_s15 }
  0x1e   :  { %p3821_p0 = por %p3820_p13, %p3819_p12 }
  0x20   :  { %p3822_p1 = pnand %p3821_p0, %p3815_p11 }
  0x22   :  { %3825 = shalt.err (!%p3822_p1)
}
  0x23   :  { %32 = dma.hbm_to_vmem [thread:$0]  %s4535_s1, 32, %s30_s16, [#allocation5]  }
  0x24   :  { %s3926_s17 = smov [#allocation9]   ;;  %s3826_s21 = scalar_lea.hbm %s4537_s3, 4096 }
  0x25   :  { %s48_s18 = sshll.u32 %s3926_s17, 4  ;;  %p3827_p2 = scmp.ne.s32.totalorder %s4537_s3, %s3826_s21  ;;  %s49_s18 = int_to_ptr.vmem [resolvable:$true] %s48_s18 }
  0x26   :  { %p3830_p3 = scmp.lt.u32.totalorder %s3826_s21, %s4537_s3 }
  0x28   :  { %p3832_p4 = pnand %p3830_p3, %p3827_p2 }
  0x2a   :  { %3835 = shalt.err (!%p3832_p4)
}
  0x2b   :  { %s3836_s26 = scalar_lea.vmem %s49_s18, 4096  ;;  %p3841_p6 = scmp.lt.s32.totalorder %s49_s18, %s49_s18 }
  0x2c   :  { %p3837_p5 = scmp.ne.s32.totalorder %s49_s18, %s3836_s26  ;;  %p3842_p7 = scmp.lt.s32.totalorder %s3836_s26, %s3836_s26 }
  0x2e   :  { %p3843_p8 = por %p3842_p7, %p3841_p6 }
  0x30   :  { %p3844_p9 = pnand %p3843_p8, %p3837_p5 }
  0x32   :  { %3847 = shalt.err (!%p3844_p9)
}
  0x33   :  { %s3927_s1 = smov 256   ;;  %s3928_s16 = smov 16  }
  0x34   :  { %54 = dma.hbm_to_vmem [thread:$0]  %s4537_s3, 4096, %s49_s18, [#allocation8], %s3927_s1, %s3927_s1, %s3928_s16  }
  0x35   :  { %s3929_s29 = smov [#allocation10]   ;;  %s3848_s13 = scalar_lea.hbm %s4538_s4, 4096 }
  0x36   :  { %s60_s30 = sshll.u32 %s3929_s29, 4  ;;  %p3849_p10 = scmp.ne.s32.totalorder %s4538_s4, %s3848_s13  ;;  %s61_s30 = int_to_ptr.vmem [resolvable:$true] %s60_s30 }
  0x37   :  { %p3852_p11 = scmp.lt.u32.totalorder %s3848_s13, %s4538_s4 }
  0x39   :  { %p3854_p12 = pnand %p3852_p11, %p3849_p10 }
  0x3b   :  { %3857 = shalt.err (!%p3854_p12)
}
  0x3c   :  { %s3858_s19 = scalar_lea.vmem %s61_s30, 4096  ;;  %p3863_p0 = scmp.lt.s32.totalorder %s61_s30, %s61_s30 }
  0x3d   :  { %p3859_p13 = scmp.ne.s32.totalorder %s61_s30, %s3858_s19  ;;  %p3864_p1 = scmp.lt.s32.totalorder %s3858_s19, %s3858_s19 }
  0x3f   :  { %p3865_p2 = por %p3864_p1, %p3863_p0 }
  0x41   :  { %p3866_p3 = pnand %p3865_p2, %p3859_p13 }
  0x43   :  { %3869 = shalt.err (!%p3866_p3)
}
  0x44   :  { %66 = dma.hbm_to_vmem [thread:$0]  %s4538_s4, 4096, %s61_s30, [#allocation11], %s3927_s1, %s3927_s1, %s3928_s16  }
  0x45   :  { %3914 = dma.done.wait [#allocation5], 32  }
  0x46   :  { %3915 = vsyncadd [#allocation5], 4294967264 }
  0x47   :  { %3916 = dma.done.wait [#allocation8], 4128  }
  0x48   :  { %3917 = vsyncadd [#allocation8], 4294963168 }
  0x49   :  { %3918 = dma.done.wait [#allocation11], 4096  }
  0x4a   :  { %3919 = vsyncadd [#allocation11], 4294963200  ;;  %v3930_v0 = vmov 0   ;;  %v3498_v1 = vld [vmem:[#allocation9 + $0x4] ss:$16 sps:$4 sm:$0xff]   ;;  %v86_v33 = vld [vmem:[%s4534_s0] sm:$0xff] }
  0x4b   :  { %335 = vmatprep.mubr.bf16.mxu0 %v3930_v0  ;;  %378 = vmatprep.mubr.bf16.mxu1 %v3930_v0  ;;  %v3500_v2 = vld [vmem:[#allocation9 + $0xc] ss:$16 sps:$4 sm:$0xff]   ;;  %v3502_v3 = vld [vmem:[#allocation9] ss:$16 sps:$4 sm:$0xff]   ;;  %v3503_v4 = vld [vmem:[#allocation9 + $0x8] ss:$16 sps:$4 sm:$0xff]  }
  0x4c   :  { %303 = vmatprep.subr.bf16.mxu0 %v3498_v1  ;;  %346 = vmatprep.subr.bf16.mxu1 %v3500_v2  ;;  %v3504_v5 = vld [vmem:[#allocation9 + $0x24] ss:$16 sps:$4 sm:$0xff]   ;;  %v3506_v6 = vld [vmem:[#allocation9 + $0x2c] ss:$16 sps:$4 sm:$0xff]   ;;  %v3508_v7 = vld [vmem:[#allocation9 + $0x20] ss:$16 sps:$4 sm:$0xff]  }
  0x4d   :  { %304 = vmatpush1.bf16.msra.mxu0 %v3502_v3  ;;  %347 = vmatpush1.bf16.msra.mxu1 %v3503_v4  ;;  %v3509_v8 = vld [vmem:[#allocation9 + $0x28] ss:$16 sps:$4 sm:$0xff]   ;;  %v3510_v9 = vld [vmem:[#allocation9 + $0x44] ss:$16 sps:$4 sm:$0xff]   ;;  %v3512_v10 = vld [vmem:[#allocation9 + $0x4c] ss:$16 sps:$4 sm:$0xff]  }
  0x4e   :  { %305 = vmatprep.subr.bf16.mxu0 %v3504_v5  ;;  %348 = vmatprep.subr.bf16.mxu1 %v3506_v6  ;;  %v3514_v11 = vld [vmem:[#allocation9 + $0x40] ss:$16 sps:$4 sm:$0xff]   ;;  %v3515_v12 = vld [vmem:[#allocation9 + $0x48] ss:$16 sps:$4 sm:$0xff]   ;;  %v3516_v13 = vld [vmem:[#allocation9 + $0x64] ss:$16 sps:$4 sm:$0xff]  }
  0x4f   :  { %v3518_v14 = vld [vmem:[#allocation9 + $0x6c] ss:$16 sps:$4 sm:$0xff]   ;;  %v3520_v15 = vld [vmem:[#allocation9 + $0x60] ss:$16 sps:$4 sm:$0xff]   ;;  %v3521_v16 = vld [vmem:[#allocation9 + $0x68] ss:$16 sps:$4 sm:$0xff]  }
  0x50   :  { %v3522_v17 = vld [vmem:[#allocation9 + $0x84] ss:$16 sps:$4 sm:$0xff]   ;;  %v3524_v18 = vld [vmem:[#allocation9 + $0x8c] ss:$16 sps:$4 sm:$0xff]   ;;  %v3526_v19 = vld [vmem:[#allocation9 + $0x80] ss:$16 sps:$4 sm:$0xff]  }
  0x51   :  { %306 = vmatpush1.bf16.msra.mxu0 %v3508_v7  ;;  %349 = vmatpush1.bf16.msra.mxu1 %v3509_v8  ;;  %v3527_v20 = vld [vmem:[#allocation9 + $0x88] ss:$16 sps:$4 sm:$0xff]   ;;  %v3528_v21 = vld [vmem:[#allocation9 + $0xa4] ss:$16 sps:$4 sm:$0xff]   ;;  %v3530_v22 = vld [vmem:[#allocation9 + $0xac] ss:$16 sps:$4 sm:$0xff]   ;;  %v123_v7 = vlaneseq }
  0x52   :  { %307 = vmatprep.subr.bf16.mxu0 %v3510_v9  ;;  %350 = vmatprep.subr.bf16.mxu1 %v3512_v10  ;;  %v3532_v23 = vld [vmem:[#allocation9 + $0xa0] ss:$16 sps:$4 sm:$0xff]   ;;  %v3533_v24 = vld [vmem:[#allocation9 + $0xa8] ss:$16 sps:$4 sm:$0xff]   ;;  %v3534_v25 = vld [vmem:[#allocation9 + $0xc4] ss:$16 sps:$4 sm:$0xff]  }
  0x53   :  { %v3536_v26 = vld [vmem:[#allocation9 + $0xcc] ss:$16 sps:$4 sm:$0xff]   ;;  %v3538_v27 = vld [vmem:[#allocation9 + $0xc0] ss:$16 sps:$4 sm:$0xff]   ;;  %v3539_v28 = vld [vmem:[#allocation9 + $0xc8] ss:$16 sps:$4 sm:$0xff]  }
  0x54   :  { %v3540_v29 = vld [vmem:[#allocation9 + $0xe4] ss:$16 sps:$4 sm:$0xff]   ;;  %v3542_v30 = vld [vmem:[#allocation9 + $0xec] ss:$16 sps:$4 sm:$0xff]   ;;  %v3544_v31 = vld [vmem:[#allocation9 + $0xe0] ss:$16 sps:$4 sm:$0xff]  }
  0x55   :  { %308 = vmatpush1.bf16.msra.mxu0 %v3514_v11  ;;  %351 = vmatpush1.bf16.msra.mxu1 %v3515_v12  ;;  %v3545_v32 = vld [vmem:[#allocation9 + $0xe8] ss:$16 sps:$4 sm:$0xff]   ;;  %v4046_v35 = vld [vmem:[#allocation10 + $0x4] ss:$16 sps:$4 sm:$0xff]   ;;  %v4048_v36 = vld [vmem:[#allocation10 + $0xc] ss:$16 sps:$4 sm:$0xff]  }
  0x56   :  { %309 = vmatprep.subr.bf16.mxu0 %v3516_v13  ;;  %352 = vmatprep.subr.bf16.mxu1 %v3518_v14  ;;  %v87_v34 = vld [vmem:[%s4534_s0 + $0x8] sm:$0xff]  ;;  %v4050_v38 = vld [vmem:[#allocation10] ss:$16 sps:$4 sm:$0xff]   ;;  %v4058_v41 = vld [vmem:[#allocation10 + $0x2c] ss:$16 sps:$4 sm:$0xff]   ;;  %v124_v8 = vshrl.u32 %v123_v7, 7 }
  0x57   :  { %v88_v37 = vpack.c.bf16 %v87_v34, %v86_v33  ;;  %v4052_v39 = vld [vmem:[#allocation10 + $0x8] ss:$16 sps:$4 sm:$0xff]   ;;  %v4056_v40 = vld [vmem:[#allocation10 + $0x24] ss:$16 sps:$4 sm:$0xff]   ;;  %v4062_v42 = vld [vmem:[#allocation10 + $0x20] ss:$16 sps:$4 sm:$0xff]  }
  0x58   :  { %v4064_v43 = vld [vmem:[#allocation10 + $0x28] ss:$16 sps:$4 sm:$0xff]   ;;  %v4068_v44 = vld [vmem:[#allocation10 + $0x44] ss:$16 sps:$4 sm:$0xff]   ;;  %v4070_v45 = vld [vmem:[#allocation10 + $0x4c] ss:$16 sps:$4 sm:$0xff]  }
  0x59   :  { %310 = vmatpush1.bf16.msra.mxu0 %v3520_v15  ;;  %353 = vmatpush1.bf16.msra.mxu1 %v3521_v16  ;;  %v4076_v46 = vld [vmem:[#allocation10 + $0x40] ss:$16 sps:$4 sm:$0xff]   ;;  %v4078_v47 = vld [vmem:[#allocation10 + $0x48] ss:$16 sps:$4 sm:$0xff]   ;;  %v4082_v48 = vld [vmem:[#allocation10 + $0x64] ss:$16 sps:$4 sm:$0xff]  }
  0x5a   :  { %311 = vmatprep.subr.bf16.mxu0 %v3522_v17  ;;  %354 = vmatprep.subr.bf16.mxu1 %v3524_v18  ;;  %v4084_v49 = vld [vmem:[#allocation10 + $0x6c] ss:$16 sps:$4 sm:$0xff]   ;;  %v4086_v50 = vld [vmem:[#allocation10 + $0x60] ss:$16 sps:$4 sm:$0xff]   ;;  %v4088_v51 = vld [vmem:[#allocation10 + $0x68] ss:$16 sps:$4 sm:$0xff]  }
  0x5b   :  { %v4090_v52 = vld [vmem:[#allocation10 + $0x84] ss:$16 sps:$4 sm:$0xff]   ;;  %v4092_v53 = vld [vmem:[#allocation10 + $0x8c] ss:$16 sps:$4 sm:$0xff]   ;;  %v4098_v54 = vld [vmem:[#allocation10 + $0x80] ss:$16 sps:$4 sm:$0xff]  }
  0x5c   :  { %v4100_v55 = vld [vmem:[#allocation10 + $0x88] ss:$16 sps:$4 sm:$0xff]   ;;  %v4102_v56 = vld [vmem:[#allocation10 + $0xa4] ss:$16 sps:$4 sm:$0xff]   ;;  %v4104_v57 = vld [vmem:[#allocation10 + $0xac] ss:$16 sps:$4 sm:$0xff]  }
  0x5d   :  { %312 = vmatpush1.bf16.msra.mxu0 %v3526_v19  ;;  %355 = vmatpush1.bf16.msra.mxu1 %v3527_v20  ;;  %v4110_v58 = vld [vmem:[#allocation10 + $0xa0] ss:$16 sps:$4 sm:$0xff]   ;;  %v4112_v59 = vld [vmem:[#allocation10 + $0xa8] ss:$16 sps:$4 sm:$0xff]   ;;  %v4114_v60 = vld [vmem:[#allocation10 + $0xc4] ss:$16 sps:$4 sm:$0xff]  }
  0x5e   :  { %313 = vmatprep.subr.bf16.mxu0 %v3528_v21  ;;  %356 = vmatprep.subr.bf16.mxu1 %v3530_v22  ;;  %v4116_v61 = vld [vmem:[#allocation10 + $0xcc] ss:$16 sps:$4 sm:$0xff]   ;;  %v4122_v62 = vld [vmem:[#allocation10 + $0xc0] ss:$16 sps:$4 sm:$0xff]   ;;  %v4124_v63 = vld [vmem:[#allocation10 + $0xc8] ss:$16 sps:$4 sm:$0xff]  }
  0x5f   :  { %v4126_v1 = vld [vmem:[#allocation10 + $0xe4] ss:$16 sps:$4 sm:$0xff]   ;;  %v4128_v2 = vld [vmem:[#allocation10 + $0xec] ss:$16 sps:$4 sm:$0xff]   ;;  %v4136_v3 = vld [vmem:[#allocation10 + $0xe0] ss:$16 sps:$4 sm:$0xff]  }
  0x60   :  { %v4138_v4 = vld [vmem:[#allocation10 + $0xe8] ss:$16 sps:$4 sm:$0xff]   ;;  %v397_v5 = vld [vmem:[#allocation4] sm:$0x3]  ;;  %v125_v9 = vsub.s32 0, %v124_v8  ;;  %v133_v10 = vsub.s32 2, %v124_v8 }
  0x61   :  { %314 = vmatpush1.bf16.msra.mxu0 %v3532_v23  ;;  %357 = vmatpush1.bf16.msra.mxu1 %v3533_v24  ;;  %v403_v6 = vpack.c.bf16 %v397_v5, %v397_v5  ;;  %v121_v11 = vld [vmem:[%s4539_s5] sm:$0xf]  ;;  %v129_v12 = vsub.s32 1, %v124_v8  ;;  %v137_v13 = vsub.s32 3, %v124_v8  ;;  %vm3932_vm0 = vmmov 0   ;;  %s3933_s19 = smov [#allocation12]  }
  0x62   :  { %315 = vmatprep.subr.bf16.mxu0 %v3534_v25  ;;  %358 = vmatprep.subr.bf16.mxu1 %v3536_v26  ;;  %v126_v14 = vrot.slane %v121_v11, %v125_v9  ;;  %v134_v15 = vrot.slane %v121_v11, %v133_v10  ;;  %s3110_s3 = sshll.u32 %s3933_s19, 4  ;;  %s3934_s18 = smov [#allocation13]   ;;  %s3111_s3 = int_to_ptr.vmem [resolvable:$true] %s3110_s3 }
  0x63   :  { %v130_v16 = vrot.slane %v121_v11, %v129_v12  ;;  %v138_v17 = vrot.slane %v121_v11, %v137_v13  ;;  %s3120_s4 = sshll.u32 %s3934_s18, 4  ;;  %s3870_s20 = scalar_lea.vmem %s3111_s3, 32  ;;  %s3121_s4 = int_to_ptr.vmem [resolvable:$true] %s3120_s4 }
  0x64   :  { %p3871_p4 = scmp.ne.s32.totalorder %s3111_s3, %s3870_s20  ;;  %p3875_p5 = scmp.lt.s32.totalorder %s3111_s3, %s3111_s3 }
  0x65   :  { %316 = vmatpush1.bf16.msra.mxu0 %v3538_v27  ;;  %359 = vmatpush1.bf16.msra.mxu1 %v3539_v28  ;;  %p3876_p6 = scmp.lt.s32.totalorder %s3870_s20, %s3870_s20 }
  0x66   :  { %317 = vmatprep.subr.bf16.mxu0 %v3540_v29  ;;  %360 = vmatprep.subr.bf16.mxu1 %v3542_v30 }
  0x67   :  { %p3877_p7 = por %p3876_p6, %p3875_p5 }
  0x69   :  { %318 = vmatpush1.bf16.msra.mxu0 %v3544_v31  ;;  %361 = vmatpush1.bf16.msra.mxu1 %v3545_v32  ;;  %p3878_p8 = pnand %p3877_p7, %p3871_p4 }
  0x6a   :  { %596 = vmatprep.subr.bf16.mxu0 %v4046_v35  ;;  %637 = vmatprep.subr.bf16.mxu1 %v4048_v36 }
  0x6c   :  { %336 = vmatmul.mubr.bf16.vlgmr.msra.gmra.mrb[0].mxu0 %v88_v37  ;;  %379 = vmatmul.mubr.bf16.vlgmr.msra.gmra.mrb[0].mxu1 %v88_v37 }
  0x6d   :  { %597 = vmatpush1.bf16.msra.mxu0 %v4050_v38  ;;  %638 = vmatpush1.bf16.msra.mxu1 %v4052_v39 }
  0x6e   :  { %598 = vmatprep.subr.bf16.mxu0 %v4056_v40  ;;  %639 = vmatprep.subr.bf16.mxu1 %v4058_v41 }
  0x6f   :  { %628 = vmatprep.mubr.bf16.mxu0 %v3930_v0  ;;  %669 = vmatprep.mubr.bf16.mxu1 %v3930_v0 }
  0x71   :  { %599 = vmatpush1.bf16.msra.mxu0 %v4062_v42  ;;  %640 = vmatpush1.bf16.msra.mxu1 %v4064_v43 }
  0x72   :  { %600 = vmatprep.subr.bf16.mxu0 %v4068_v44  ;;  %641 = vmatprep.subr.bf16.mxu1 %v4070_v45 }
  0x75   :  { %601 = vmatpush1.bf16.msra.mxu0 %v4076_v46  ;;  %642 = vmatpush1.bf16.msra.mxu1 %v4078_v47 }
  0x76   :  { %602 = vmatprep.subr.bf16.mxu0 %v4082_v48  ;;  %643 = vmatprep.subr.bf16.mxu1 %v4084_v49 }
  0x79   :  { %603 = vmatpush1.bf16.msra.mxu0 %v4086_v50  ;;  %644 = vmatpush1.bf16.msra.mxu1 %v4088_v51 }
  0x7a   :  { %604 = vmatprep.subr.bf16.mxu0 %v4090_v52  ;;  %645 = vmatprep.subr.bf16.mxu1 %v4092_v53 }
  0x7d   :  { %605 = vmatpush1.bf16.msra.mxu0 %v4098_v54  ;;  %646 = vmatpush1.bf16.msra.mxu1 %v4100_v55 }
  0x7e   :  { %606 = vmatprep.subr.bf16.mxu0 %v4102_v56  ;;  %647 = vmatprep.subr.bf16.mxu1 %v4104_v57 }
  0x81   :  { %607 = vmatpush1.bf16.msra.mxu0 %v4110_v58  ;;  %648 = vmatpush1.bf16.msra.mxu1 %v4112_v59 }
  0x82   :  { %608 = vmatprep.subr.bf16.mxu0 %v4114_v60  ;;  %649 = vmatprep.subr.bf16.mxu1 %v4116_v61 }
  0x85   :  { %609 = vmatpush1.bf16.msra.mxu0 %v4122_v62  ;;  %650 = vmatpush1.bf16.msra.mxu1 %v4124_v63 }
  0x86   :  { %610 = vmatprep.subr.bf16.mxu0 %v4126_v1  ;;  %651 = vmatprep.subr.bf16.mxu1 %v4128_v2 }
  0x89   :  { %611 = vmatpush1.bf16.msra.mxu0 %v4136_v3  ;;  %652 = vmatpush1.bf16.msra.mxu1 %v4138_v4 }
  0x8a   :  { %904 = vmatprep.subr.bf16.mxu0 %v4046_v35  ;;  %945 = vmatprep.subr.bf16.mxu1 %v4048_v36 }
  0x8c   :  { %629 = vmatmul.mubr.bf16.vlgmr.msra.gmra.mrb[4].mxu0 %v403_v6  ;;  %670 = vmatmul.mubr.bf16.vlgmr.msra.gmra.mrb[4].mxu1 %v403_v6 }
  0x8d   :  { %905 = vmatpush1.bf16.msra.mxu0 %v4050_v38  ;;  %946 = vmatpush1.bf16.msra.mxu1 %v4052_v39 }
  0x8e   :  { %906 = vmatprep.subr.bf16.mxu0 %v4056_v40  ;;  %947 = vmatprep.subr.bf16.mxu1 %v4058_v41 }
  0x8f   :  { %936 = vmatprep.mubr.bf16.mxu0 %v3930_v0  ;;  %977 = vmatprep.mubr.bf16.mxu1 %v3930_v0 }
  0x91   :  { %907 = vmatpush1.bf16.msra.mxu0 %v4062_v42  ;;  %948 = vmatpush1.bf16.msra.mxu1 %v4064_v43 }
  0x92   :  { %908 = vmatprep.subr.bf16.mxu0 %v4068_v44  ;;  %949 = vmatprep.subr.bf16.mxu1 %v4070_v45 }
  0x95   :  { %909 = vmatpush1.bf16.msra.mxu0 %v4076_v46  ;;  %950 = vmatpush1.bf16.msra.mxu1 %v4078_v47 }
  0x96   :  { %910 = vmatprep.subr.bf16.mxu0 %v4082_v48  ;;  %951 = vmatprep.subr.bf16.mxu1 %v4084_v49 }
  0x99   :  { %911 = vmatpush1.bf16.msra.mxu0 %v4086_v50  ;;  %952 = vmatpush1.bf16.msra.mxu1 %v4088_v51 }
  0x9a   :  { %912 = vmatprep.subr.bf16.mxu0 %v4090_v52  ;;  %953 = vmatprep.subr.bf16.mxu1 %v4092_v53 }
  0x9d   :  { %913 = vmatpush1.bf16.msra.mxu0 %v4098_v54  ;;  %954 = vmatpush1.bf16.msra.mxu1 %v4100_v55 }
  0x9e   :  { %914 = vmatprep.subr.bf16.mxu0 %v4102_v56  ;;  %955 = vmatprep.subr.bf16.mxu1 %v4104_v57 }
  0xa1   :  { %915 = vmatpush1.bf16.msra.mxu0 %v4110_v58  ;;  %956 = vmatpush1.bf16.msra.mxu1 %v4112_v59 }
  0xa2   :  { %916 = vmatprep.subr.bf16.mxu0 %v4114_v60  ;;  %957 = vmatprep.subr.bf16.mxu1 %v4116_v61 }
  0xa5   :  { %917 = vmatpush1.bf16.msra.mxu0 %v4122_v62  ;;  %958 = vmatpush1.bf16.msra.mxu1 %v4124_v63 }
  0xa6   :  { %918 = vmatprep.subr.bf16.mxu0 %v4126_v1  ;;  %959 = vmatprep.subr.bf16.mxu1 %v4128_v2 }
  0xa9   :  { %919 = vmatpush1.bf16.msra.mxu0 %v4136_v3  ;;  %960 = vmatpush1.bf16.msra.mxu1 %v4138_v4 }
  0xaa   :  { %1230 = vmatprep.subr.bf16.mxu0 %v4046_v35  ;;  %1271 = vmatprep.subr.bf16.mxu1 %v4048_v36 }
 0x13f   :  { %v337_v18 = vpop.f32.mrb[0].mxu0  ;;  %v380_v19 = vpop.f32.mrb[0].mxu1 }
 0x140   :  { %v338_v20 = vadd.f32 %v337_v18, %v126_v14  ;;  %v339_v21 = vpop.f32.mrb[1].mxu0  ;;  %v381_v22 = vadd.f32 %v380_v19, %v134_v15  ;;  %v382_v23 = vpop.f32.mrb[1].mxu1 }
 0x141   :  { %v340_v24 = vadd.f32 %v339_v21, %v130_v16  ;;  %v341_v25 = vpop.f32.mrb[2].mxu0  ;;  %v383_v26 = vadd.f32 %v382_v23, %v138_v17  ;;  %v384_v27 = vpop.f32.mrb[2].mxu1 }
 0x142   :  { %389 = vst [vmem:[#allocation2] sm:$0xff] %v338_v20  ;;  %v342_v28 = vadd.f32 %v341_v25, %v126_v14  ;;  %v343_v29 = vpop.f32.mrb[3].mxu0  ;;  %391 = vst [vmem:[#allocation2 + $0x10] sm:$0xff] %v381_v22  ;;  %v385_v30 = vadd.f32 %v384_v27, %v134_v15  ;;  %v386_v31 = vpop.f32.mrb[3].mxu1 }
 0x143   :  { %390 = vst [vmem:[#allocation2 + $0x8] sm:$0xff] %v340_v24  ;;  %v344_v32 = vadd.f32 %v343_v29, %v130_v16  ;;  %392 = vst [vmem:[#allocation2 + $0x18] sm:$0xff] %v383_v26  ;;  %v387_v33 = vadd.f32 %v386_v31, %v138_v17 }
 0x144   :  { %393 = vst [vmem:[#allocation2 + $0x20] sm:$0xff] %v342_v28  ;;  %395 = vst [vmem:[#allocation2 + $0x30] sm:$0xff] %v385_v30  ;;  %v398_v28 = vld [vmem:[#allocation7] sm:$0x3] }
 0x145   :  { %394 = vst [vmem:[#allocation2 + $0x28] sm:$0xff] %v344_v32  ;;  %396 = vst [vmem:[#allocation2 + $0x38] sm:$0xff] %v387_v33 }
 0x149   :  { %v399_v34 = vld [vmem:[#allocation2] sm:$0x3]  ;;  %v401_v19 = vld [vmem:[#allocation2 + $0x10] sm:$0x3] }
 0x14a   :  { %v400_v7 = vld [vmem:[#allocation2 + $0x8] sm:$0x3]  ;;  %v402_v17 = vld [vmem:[#allocation2 + $0x18] sm:$0x3] }
 0x15f   :  { %v630_v37 = vpop.f32.mrb[4].mxu0  ;;  %v671_v5 = vpop.f32.mrb[4].mxu1 }
 0x160   :  { %v678_v6 = vadd.f32 %v630_v37, %v399_v34  ;;  %v632_v8 = vpop.f32.mrb[5].mxu0  ;;  %v673_v9 = vpop.f32.mrb[5].mxu1  ;;  %v680_v21 = vadd.f32 %v671_v5, %v401_v19 }
 0x161   :  { %v679_v10 = vadd.f32 %v632_v8, %v400_v7  ;;  %v634_v11 = vpop.f32.mrb[6].mxu0  ;;  %v675_v12 = vpop.f32.mrb[6].mxu1  ;;  %v681_v18 = vadd.f32 %v673_v9, %v402_v17 }
 0x162   :  { %v3201_v13 = vmul.f32 -1.442695, %v678_v6  ;;  %v635_v14 = vpop.f32.mrb[7].mxu0  ;;  %v676_v15 = vpop.f32.mrb[7].mxu1 }
 0x163   :  { %v3202_v16 = vmul.f32 -1.442695, %v679_v10  ;;  %v3203_v20 = vmul.f32 -1.442695, %v681_v18  ;;  %v708_v18 = vld [vmem:[#allocation2 + $0x8] sm:$0xc] }
 0x164   :  { %3650 = vpow2.f32 %v3201_v13  ;;  %v707_v13 = vld [vmem:[#allocation2] sm:$0xc] }
 0x165   :  { %3652 = vpow2.f32 %v3202_v16 }
 0x166   :  { %3654 = vpow2.f32 %v3203_v20 }
 0x167   :  { %3656 = vtanh.f32 %v680_v21 }
 0x16e   :  { %v3651_v22 = vpop.eup %3650 }
 0x16f   :  { %v3653_v23 = vpop.eup %3652  ;;  %v685_v24 = vadd.f32 1.0, %v3651_v22 }
 0x170   :  { %v691_v25 = vadd.f32 1.0, %v3653_v23  ;;  %v3655_v26 = vpop.eup %3654 }
 0x171   :  { %3658 = vrcp.f32 %v685_v24  ;;  %v3657_v27 = vpop.eup %3656  ;;  %v698_v32 = vadd.f32 1.0, %v3655_v26  ;;  %v709_v26 = vld [vmem:[#allocation2 + $0x10] sm:$0xc] }
 0x172   :  { %3660 = vrcp.f32 %v691_v25 }
 0x173   :  { %3662 = vrcp.f32 %v698_v32 }
 0x17b   :  { %v3659_v29 = vpop.eup %3658 }
 0x17c   :  { %v3661_v30 = vpop.eup %3660  ;;  %v702_v31 = vmul.f32 %v3659_v29, %v3657_v27 }
 0x17d   :  { %v701_v33 = vmul.f32 %v3661_v30, %v398_v28  ;;  %v3663_v37 = vpop.eup %3662 }
 0x17f   :  { %v4183_v34 = vadd.f32 %v702_v31, %v701_v33 }
 0x181   :  { %3664 = vtanh.f32 %v4183_v34 }
 0x18b   :  { %v3665_v5 = vpop.eup %3664 }
 0x18c   :  { %v705_v6 = vmul.f32 %v3665_v5, %v3663_v37 }
 0x18e   :  { %706 = vst [vmem:[#allocation3] sm:$0x3] %v705_v6  ;;  %v711_v7 = vpack.c.bf16 %v705_v6, %v705_v6  ;;  %v1022_v6 = vrot.slane %v4183_v34, 6 }
 0x190   :  { %937 = vmatmul.mubr.bf16.vlgmr.msra.gmra.mrb[8].mxu0 %v711_v7  ;;  %978 = vmatmul.mubr.bf16.vlgmr.msra.gmra.mrb[8].mxu1 %v711_v7 }
 0x191   :  { %1231 = vmatpush1.bf16.msra.mxu0 %v4050_v38  ;;  %1272 = vmatpush1.bf16.msra.mxu1 %v4052_v39 }
 0x192   :  { %1232 = vmatprep.subr.bf16.mxu0 %v4056_v40  ;;  %1273 = vmatprep.subr.bf16.mxu1 %v4058_v41 }
 0x193   :  { %1262 = vmatprep.mubr.bf16.mxu0 %v3930_v0  ;;  %1303 = vmatprep.mubr.bf16.mxu1 %v3930_v0 }
 0x195   :  { %1233 = vmatpush1.bf16.msra.mxu0 %v4062_v42  ;;  %1274 = vmatpush1.bf16.msra.mxu1 %v4064_v43 }
 0x196   :  { %1234 = vmatprep.subr.bf16.mxu0 %v4068_v44  ;;  %1275 = vmatprep.subr.bf16.mxu1 %v4070_v45 }
 0x199   :  { %1235 = vmatpush1.bf16.msra.mxu0 %v4076_v46  ;;  %1276 = vmatpush1.bf16.msra.mxu1 %v4078_v47 }
 0x19a   :  { %1236 = vmatprep.subr.bf16.mxu0 %v4082_v48  ;;  %1277 = vmatprep.subr.bf16.mxu1 %v4084_v49 }
 0x19d   :  { %1237 = vmatpush1.bf16.msra.mxu0 %v4086_v50  ;;  %1278 = vmatpush1.bf16.msra.mxu1 %v4088_v51 }
 0x19e   :  { %1238 = vmatprep.subr.bf16.mxu0 %v4090_v52  ;;  %1279 = vmatprep.subr.bf16.mxu1 %v4092_v53 }
 0x1a1   :  { %1239 = vmatpush1.bf16.msra.mxu0 %v4098_v54  ;;  %1280 = vmatpush1.bf16.msra.mxu1 %v4100_v55 }
 0x1a2   :  { %1240 = vmatprep.subr.bf16.mxu0 %v4102_v56  ;;  %1281 = vmatprep.subr.bf16.mxu1 %v4104_v57 }
 0x1a5   :  { %1241 = vmatpush1.bf16.msra.mxu0 %v4110_v58  ;;  %1282 = vmatpush1.bf16.msra.mxu1 %v4112_v59 }
 0x1a6   :  { %1242 = vmatprep.subr.bf16.mxu0 %v4114_v60  ;;  %1283 = vmatprep.subr.bf16.mxu1 %v4116_v61 }
 0x1a9   :  { %1243 = vmatpush1.bf16.msra.mxu0 %v4122_v62  ;;  %1284 = vmatpush1.bf16.msra.mxu1 %v4124_v63 }
 0x1aa   :  { %1244 = vmatprep.subr.bf16.mxu0 %v4126_v1  ;;  %1285 = vmatprep.subr.bf16.mxu1 %v4128_v2 }
 0x1ad   :  { %1245 = vmatpush1.bf16.msra.mxu0 %v4136_v3  ;;  %1286 = vmatpush1.bf16.msra.mxu1 %v4138_v4 }
 0x1ae   :  { %1556 = vmatprep.subr.bf16.mxu0 %v4046_v35  ;;  %1597 = vmatprep.subr.bf16.mxu1 %v4048_v36  ;;  %v710_v35 = vld [vmem:[#allocation2 + $0x18] sm:$0xc] }
 0x263   :  { %v938_v8 = vpop.f32.mrb[8].mxu0  ;;  %v979_v9 = vpop.f32.mrb[8].mxu1 }
 0x264   :  { %v990_v10 = vrot.slane %v938_v8, 6  ;;  %v940_v11 = vpop.f32.mrb[9].mxu0  ;;  %v981_v12 = vpop.f32.mrb[9].mxu1  ;;  %v992_v25 = vrot.slane %v979_v9, 6 }
 0x265   :  { %v991_v14 = vrot.slane %v940_v11, 6  ;;  %v942_v15 = vpop.f32.mrb[10].mxu0  ;;  %v983_v16 = vpop.f32.mrb[10].mxu1  ;;  %v993_v24 = vrot.slane %v981_v12, 6 }
 0x266   :  { %v998_v17 = vadd.f32 %v990_v10, %v707_v13  ;;  %v943_v19 = vpop.f32.mrb[11].mxu0  ;;  %v984_v20 = vpop.f32.mrb[11].mxu1  ;;  %v1000_v28 = vadd.f32 %v992_v25, %v709_v26  ;;  %v4262_v25 = vld [vmem:[#allocation10 + $0x4] ss:$16 sps:$4 sm:$0xff]   ;;  %v4264_v26 = vld [vmem:[#allocation10 + $0xc] ss:$16 sps:$4 sm:$0xff]  }
 0x267   :  { %v999_v21 = vadd.f32 %v991_v14, %v708_v18  ;;  %v1001_v36 = vadd.f32 %v993_v24, %v710_v35 }
 0x268   :  { %v3236_v22 = vmul.f32 -1.442695, %v998_v17 }
 0x269   :  { %v3237_v23 = vmul.f32 -1.442695, %v999_v21  ;;  %v3238_v27 = vmul.f32 -1.442695, %v1001_v36 }
 0x26a   :  { %3666 = vpow2.f32 %v3236_v22 }
 0x26b   :  { %3668 = vpow2.f32 %v3237_v23 }
 0x26c   :  { %3670 = vpow2.f32 %v3238_v27  ;;  %v4266_v27 = vld [vmem:[#allocation10] ss:$16 sps:$4 sm:$0xff]  }
 0x26d   :  { %3672 = vtanh.f32 %v1000_v28  ;;  %v4268_v28 = vld [vmem:[#allocation10 + $0x8] ss:$16 sps:$4 sm:$0xff]  }
 0x274   :  { %v3667_v29 = vpop.eup %3666 }
 0x275   :  { %v3669_v30 = vpop.eup %3668  ;;  %v1005_v31 = vadd.f32 1.0, %v3667_v29  ;;  %v4274_v29 = vld [vmem:[#allocation10 + $0x24] ss:$16 sps:$4 sm:$0xff]  }
 0x276   :  { %v1011_v32 = vadd.f32 1.0, %v3669_v30  ;;  %v3671_v33 = vpop.eup %3670  ;;  %v4276_v30 = vld [vmem:[#allocation10 + $0x2c] ss:$16 sps:$4 sm:$0xff]  }
 0x277   :  { %3674 = vrcp.f32 %v1005_v31  ;;  %v3673_v37 = vpop.eup %3672  ;;  %v1018_v10 = vadd.f32 1.0, %v3671_v33  ;;  %v4278_v31 = vld [vmem:[#allocation10 + $0x20] ss:$16 sps:$4 sm:$0xff]   ;;  %v4286_v33 = vld [vmem:[#allocation10 + $0x44] ss:$16 sps:$4 sm:$0xff]  }
 0x278   :  { %3676 = vrcp.f32 %v1011_v32  ;;  %v4280_v32 = vld [vmem:[#allocation10 + $0x28] ss:$16 sps:$4 sm:$0xff]  }
 0x279   :  { %3678 = vrcp.f32 %v1018_v10  ;;  %v4302_v10 = vld [vmem:[#allocation10 + $0x68] ss:$16 sps:$4 sm:$0xff]  }
 0x281   :  { %v3675_v5 = vpop.eup %3674 }
 0x282   :  { %v3677_v7 = vpop.eup %3676  ;;  %v1025_v8 = vmul.f32 %v3675_v5, %v3673_v37  ;;  %v4288_v37 = vld [vmem:[#allocation10 + $0x4c] ss:$16 sps:$4 sm:$0xff]   ;;  %v4290_v5 = vld [vmem:[#allocation10 + $0x40] ss:$16 sps:$4 sm:$0xff]  }
 0x283   :  { %v1024_v9 = vmul.f32 %v3677_v7, %v1022_v6  ;;  %v3679_v12 = vpop.eup %3678  ;;  %v4292_v6 = vld [vmem:[#allocation10 + $0x48] ss:$16 sps:$4 sm:$0xff]   ;;  %v4298_v7 = vld [vmem:[#allocation10 + $0x60] ss:$16 sps:$4 sm:$0xff]  }
 0x285   :  { %v4221_v11 = vadd.f32 %v1025_v8, %v1024_v9  ;;  %v4300_v8 = vld [vmem:[#allocation10 + $0x64] ss:$16 sps:$4 sm:$0xff]   ;;  %v4304_v9 = vld [vmem:[#allocation10 + $0x6c] ss:$16 sps:$4 sm:$0xff]  }
 0x287   :  { %3680 = vtanh.f32 %v4221_v11  ;;  %v1348_v34 = vrot.slane %v4221_v11, 6  ;;  %v4306_v11 = vld [vmem:[#allocation10 + $0x84] ss:$16 sps:$4 sm:$0xff]  }
 0x291   :  { %v3681_v13 = vpop.eup %3680 }
 0x292   :  { %v1028_v14 = vmul.f32 %v3681_v13, %v3679_v12  ;;  %v4309_v12 = vld [vmem:[#allocation10 + $0x8c] ss:$16 sps:$4 sm:$0xff]   ;;  %v4313_v13 = vld [vmem:[#allocation10 + $0x80] ss:$16 sps:$4 sm:$0xff]  }
 0x294   :  { %1029 = vst [vmem:[#allocation3] sm:$0xc] %v1028_v14  ;;  %v1034_v15 = vpack.c.bf16 %v1028_v14, %v1028_v14  ;;  %v4317_v14 = vld [vmem:[#allocation10 + $0x88] ss:$16 sps:$4 sm:$0xff]  }
 0x296   :  { %v1068_v16 = vrot.slane %v1034_v15, 1  ;;  %v4319_v15 = vld [vmem:[#allocation10 + $0xa4] ss:$16 sps:$4 sm:$0xff]  }
 0x298   :  { %1263 = vmatmul.mubr.bf16.vlgmr.msra.gmra.mrb[12].mxu0 %v1068_v16  ;;  %1304 = vmatmul.mubr.bf16.vlgmr.msra.gmra.mrb[12].mxu1 %v1068_v16  ;;  %v4322_v16 = vld [vmem:[#allocation10 + $0xac] ss:$16 sps:$4 sm:$0xff]  }
 0x299   :  { %1557 = vmatpush1.bf16.msra.mxu0 %v4050_v38  ;;  %1598 = vmatpush1.bf16.msra.mxu1 %v4052_v39 }
 0x29a   :  { %1558 = vmatprep.subr.bf16.mxu0 %v4056_v40  ;;  %1599 = vmatprep.subr.bf16.mxu1 %v4058_v41 }
 0x29b   :  { %1588 = vmatprep.mubr.bf16.mxu0 %v3930_v0  ;;  %1629 = vmatprep.mubr.bf16.mxu1 %v3930_v0 }
 0x29d   :  { %1559 = vmatpush1.bf16.msra.mxu0 %v4062_v42  ;;  %1600 = vmatpush1.bf16.msra.mxu1 %v4064_v43  ;;  %v1030_v43 = vld [vmem:[#allocation2] sm:$0x30] }
 0x29e   :  { %1560 = vmatprep.subr.bf16.mxu0 %v4068_v44  ;;  %1601 = vmatprep.subr.bf16.mxu1 %v4070_v45 }
 0x2a1   :  { %1561 = vmatpush1.bf16.msra.mxu0 %v4076_v46  ;;  %1602 = vmatpush1.bf16.msra.mxu1 %v4078_v47 }
 0x2a2   :  { %1562 = vmatprep.subr.bf16.mxu0 %v4082_v48  ;;  %1603 = vmatprep.subr.bf16.mxu1 %v4084_v49  ;;  %v1031_v48 = vld [vmem:[#allocation2 + $0x8] sm:$0x30] }
 0x2a5   :  { %1563 = vmatpush1.bf16.msra.mxu0 %v4086_v50  ;;  %1604 = vmatpush1.bf16.msra.mxu1 %v4088_v51 }
 0x2a6   :  { %1564 = vmatprep.subr.bf16.mxu0 %v4090_v52  ;;  %1605 = vmatprep.subr.bf16.mxu1 %v4092_v53 }
 0x2a9   :  { %1565 = vmatpush1.bf16.msra.mxu0 %v4098_v54  ;;  %1606 = vmatpush1.bf16.msra.mxu1 %v4100_v55  ;;  %v1033_v55 = vld [vmem:[#allocation2 + $0x18] sm:$0x30] }
 0x2aa   :  { %1566 = vmatprep.subr.bf16.mxu0 %v4102_v56  ;;  %1607 = vmatprep.subr.bf16.mxu1 %v4104_v57 }
 0x2ad   :  { %1567 = vmatpush1.bf16.msra.mxu0 %v4110_v58  ;;  %1608 = vmatpush1.bf16.msra.mxu1 %v4112_v59  ;;  %v1032_v58 = vld [vmem:[#allocation2 + $0x10] sm:$0x30] }
 0x2ae   :  { %1568 = vmatprep.subr.bf16.mxu0 %v4114_v60  ;;  %1609 = vmatprep.subr.bf16.mxu1 %v4116_v61 }
 0x2b1   :  { %1569 = vmatpush1.bf16.msra.mxu0 %v4122_v62  ;;  %1610 = vmatpush1.bf16.msra.mxu1 %v4124_v63 }
 0x2b2   :  { %1570 = vmatprep.subr.bf16.mxu0 %v4126_v1  ;;  %1611 = vmatprep.subr.bf16.mxu1 %v4128_v2 }
 0x2b5   :  { %1571 = vmatpush1.bf16.msra.mxu0 %v4136_v3  ;;  %1612 = vmatpush1.bf16.msra.mxu1 %v4138_v4 }
 0x2b6   :  { %1882 = vmatprep.subr.bf16.mxu0 %v4262_v25  ;;  %1923 = vmatprep.subr.bf16.mxu1 %v4264_v26 }
 0x36b   :  { %v1264_v38 = vpop.f32.mrb[12].mxu0  ;;  %v1305_v39 = vpop.f32.mrb[12].mxu1 }
 0x36c   :  { %v1316_v40 = vrot.slane %v1264_v38, 4  ;;  %v1266_v41 = vpop.f32.mrb[13].mxu0  ;;  %v1307_v42 = vpop.f32.mrb[13].mxu1  ;;  %v1318_v57 = vrot.slane %v1305_v39, 4  ;;  %v4325_v38 = vld [vmem:[#allocation10 + $0xa0] ss:$16 sps:$4 sm:$0xff]  }
 0x36d   :  { %v1317_v44 = vrot.slane %v1266_v41, 4  ;;  %v1268_v45 = vpop.f32.mrb[14].mxu0  ;;  %v1309_v46 = vpop.f32.mrb[14].mxu1  ;;  %v1319_v54 = vrot.slane %v1307_v42, 4  ;;  %v4329_v39 = vld [vmem:[#allocation10 + $0xa8] ss:$16 sps:$4 sm:$0xff]  }
 0x36e   :  { %v1324_v47 = vadd.f32 %v1316_v40, %v1030_v43  ;;  %v1269_v49 = vpop.f32.mrb[15].mxu0  ;;  %v1310_v50 = vpop.f32.mrb[15].mxu1  ;;  %v1326_v60 = vadd.f32 %v1318_v57, %v1032_v58  ;;  %v4331_v40 = vld [vmem:[#allocation10 + $0xc4] ss:$16 sps:$4 sm:$0xff]   ;;  %v4334_v41 = vld [vmem:[#allocation10 + $0xcc] ss:$16 sps:$4 sm:$0xff]  }
 0x36f   :  { %v1325_v51 = vadd.f32 %v1317_v44, %v1031_v48  ;;  %v1327_v56 = vadd.f32 %v1319_v54, %v1033_v55  ;;  %v4337_v42 = vld [vmem:[#allocation10 + $0xc0] ss:$16 sps:$4 sm:$0xff]   ;;  %v4341_v43 = vld [vmem:[#allocation10 + $0xc8] ss:$16 sps:$4 sm:$0xff]   ;;  %v4343_v44 = vld [vmem:[#allocation10 + $0xe4] ss:$16 sps:$4 sm:$0xff]  }
 0x370   :  { %v3271_v52 = vmul.f32 -1.442695, %v1324_v47  ;;  %v4346_v45 = vld [vmem:[#allocation10 + $0xec] ss:$16 sps:$4 sm:$0xff]   ;;  %v4349_v46 = vld [vmem:[#allocation10 + $0xe0] ss:$16 sps:$4 sm:$0xff]  }
 0x371   :  { %v3272_v53 = vmul.f32 -1.442695, %v1325_v51  ;;  %v3273_v59 = vmul.f32 -1.442695, %v1327_v56  ;;  %v4353_v47 = vld [vmem:[#allocation10 + $0xe8] ss:$16 sps:$4 sm:$0xff]  }
 0x372   :  { %3682 = vpow2.f32 %v3271_v52  ;;  %v1357_v58 = vld [vmem:[#allocation2 + $0x8] sm:$0xc0] }
 0x373   :  { %3684 = vpow2.f32 %v3272_v53  ;;  %v1356_v53 = vld [vmem:[#allocation2] sm:$0xc0] }
 0x374   :  { %3686 = vpow2.f32 %v3273_v59 }
 0x375   :  { %3688 = vtanh.f32 %v1326_v60 }
 0x37c   :  { %v3683_v61 = vpop.eup %3682 }
 0x37d   :  { %v3685_v62 = vpop.eup %3684  ;;  %v1331_v63 = vadd.f32 1.0, %v3683_v61 }
 0x37e   :  { %v1337_v1 = vadd.f32 1.0, %v3685_v62  ;;  %v3687_v2 = vpop.eup %3686 }
 0x37f   :  { %3690 = vrcp.f32 %v1331_v63  ;;  %v3689_v3 = vpop.eup %3688  ;;  %v1344_v19 = vadd.f32 1.0, %v3687_v2  ;;  %v1359_v2 = vld [vmem:[#allocation2 + $0x18] sm:$0xc0] }
 0x380   :  { %3692 = vrcp.f32 %v1337_v1 }
 0x381   :  { %3694 = vrcp.f32 %v1344_v19 }
 0x389   :  { %v3691_v4 = vpop.eup %3690 }
 0x38a   :  { %v3693_v17 = vpop.eup %3692  ;;  %v1351_v18 = vmul.f32 %v3691_v4, %v3689_v3 }
 0x38b   :  { %v1350_v20 = vmul.f32 %v3693_v17, %v1348_v34  ;;  %v3695_v22 = vpop.eup %3694  ;;  %v1358_v34 = vld [vmem:[#allocation2 + $0x10] sm:$0xc0] }
 0x38d   :  { %v4257_v21 = vadd.f32 %v1351_v18, %v1350_v20 }
 0x38f   :  { %3696 = vtanh.f32 %v4257_v21 }
 0x399   :  { %v3697_v23 = vpop.eup %3696 }
 0x39a   :  { %v1354_v24 = vmul.f32 %v3697_v23, %v3695_v22 }
 0x39c   :  { %1355 = vst [vmem:[#allocation3] sm:$0x30] %v1354_v24  ;;  %v1360_v35 = vpack.c.bf16 %v1354_v24, %v1354_v24 }
 0x39e   :  { %v1394_v36 = vrot.slane %v1360_v35, 2 }
 0x3a0   :  { %1589 = vmatmul.mubr.bf16.vlgmr.msra.gmra.mrb[16].mxu0 %v1394_v36  ;;  %1630 = vmatmul.mubr.bf16.vlgmr.msra.gmra.mrb[16].mxu1 %v1394_v36 }
 0x3a1   :  { %1914 = vmatprep.mubr.bf16.mxu0 %v3930_v0  ;;  %1955 = vmatprep.mubr.bf16.mxu1 %v3930_v0 }
 0x3a2   :  { %1883 = vmatpush1.bf16.msra.mxu0 %v4266_v27  ;;  %1924 = vmatpush1.bf16.msra.mxu1 %v4268_v28 }
 0x3a3   :  { %1884 = vmatprep.subr.bf16.mxu0 %v4274_v29  ;;  %1925 = vmatprep.subr.bf16.mxu1 %v4276_v30 }
 0x3a6   :  { %1885 = vmatpush1.bf16.msra.mxu0 %v4278_v31  ;;  %1926 = vmatpush1.bf16.msra.mxu1 %v4280_v32 }
 0x3a7   :  { %1886 = vmatprep.subr.bf16.mxu0 %v4286_v33  ;;  %1927 = vmatprep.subr.bf16.mxu1 %v4288_v37 }
 0x3aa   :  { %1887 = vmatpush1.bf16.msra.mxu0 %v4290_v5  ;;  %1928 = vmatpush1.bf16.msra.mxu1 %v4292_v6 }
 0x3ab   :  { %1888 = vmatprep.subr.bf16.mxu0 %v4300_v8  ;;  %1929 = vmatprep.subr.bf16.mxu1 %v4304_v9 }
 0x3ae   :  { %1889 = vmatpush1.bf16.msra.mxu0 %v4298_v7  ;;  %1930 = vmatpush1.bf16.msra.mxu1 %v4302_v10 }
 0x3af   :  { %1890 = vmatprep.subr.bf16.mxu0 %v4306_v11  ;;  %1931 = vmatprep.subr.bf16.mxu1 %v4309_v12 }
 0x3b2   :  { %1891 = vmatpush1.bf16.msra.mxu0 %v4313_v13  ;;  %1932 = vmatpush1.bf16.msra.mxu1 %v4317_v14 }
 0x3b3   :  { %1892 = vmatprep.subr.bf16.mxu0 %v4319_v15  ;;  %1933 = vmatprep.subr.bf16.mxu1 %v4322_v16 }
 0x3b6   :  { %1893 = vmatpush1.bf16.msra.mxu0 %v4325_v38  ;;  %1934 = vmatpush1.bf16.msra.mxu1 %v4329_v39 }
 0x3b7   :  { %1894 = vmatprep.subr.bf16.mxu0 %v4331_v40  ;;  %1935 = vmatprep.subr.bf16.mxu1 %v4334_v41 }
 0x3ba   :  { %1895 = vmatpush1.bf16.msra.mxu0 %v4337_v42  ;;  %1936 = vmatpush1.bf16.msra.mxu1 %v4341_v43 }
 0x3bb   :  { %1896 = vmatprep.subr.bf16.mxu0 %v4343_v44  ;;  %1937 = vmatprep.subr.bf16.mxu1 %v4346_v45 }
 0x3be   :  { %1897 = vmatpush1.bf16.msra.mxu0 %v4349_v46  ;;  %1938 = vmatpush1.bf16.msra.mxu1 %v4353_v47 }
 0x3bf   :  { %2193 = vmatprep.subr.bf16.mxu0 %v4262_v25  ;;  %2234 = vmatprep.subr.bf16.mxu1 %v4264_v26 }
 0x473   :  { %v1590_v48 = vpop.f32.mrb[16].mxu0  ;;  %v1631_v49 = vpop.f32.mrb[16].mxu1 }
 0x474   :  { %v1642_v50 = vrot.slane %v1590_v48, 2  ;;  %v1592_v51 = vpop.f32.mrb[17].mxu0  ;;  %v1633_v52 = vpop.f32.mrb[17].mxu1  ;;  %v1644_v4 = vrot.slane %v1631_v49, 2  ;;  %v1674_v48 = vrot.slane %v4257_v21, 6 }
 0x475   :  { %v1643_v54 = vrot.slane %v1592_v51, 2  ;;  %v1594_v55 = vpop.f32.mrb[18].mxu0  ;;  %v1635_v56 = vpop.f32.mrb[18].mxu1  ;;  %v1645_v1 = vrot.slane %v1633_v52, 2  ;;  %v1682_v21 = vld [vmem:[#allocation2 + $0x20] sm:$0x3] }
 0x476   :  { %v1650_v57 = vadd.f32 %v1642_v50, %v1356_v53  ;;  %v1595_v59 = vpop.f32.mrb[19].mxu0  ;;  %v1636_v60 = vpop.f32.mrb[19].mxu1  ;;  %v1652_v18 = vadd.f32 %v1644_v4, %v1358_v34 }
 0x477   :  { %v1651_v61 = vadd.f32 %v1643_v54, %v1357_v58  ;;  %v1653_v3 = vadd.f32 %v1645_v1, %v1359_v2 }
 0x478   :  { %v3306_v62 = vmul.f32 -1.442695, %v1650_v57 }
 0x479   :  { %v3307_v63 = vmul.f32 -1.442695, %v1651_v61  ;;  %v3308_v17 = vmul.f32 -1.442695, %v1653_v3 }
 0x47a   :  { %3698 = vpow2.f32 %v3306_v62  ;;  %v1683_v62 = vld [vmem:[#allocation2 + $0x28] sm:$0x3] }
 0x47b   :  { %3700 = vpow2.f32 %v3307_v63 }
 0x47c   :  { %3702 = vpow2.f32 %v3308_v17 }
 0x47d   :  { %3704 = vtanh.f32 %v1652_v18 }
 0x484   :  { %v3699_v19 = vpop.eup %3698 }
 0x485   :  { %v3701_v20 = vpop.eup %3700  ;;  %v1657_v22 = vadd.f32 1.0, %v3699_v19 }
 0x486   :  { %v1663_v23 = vadd.f32 1.0, %v3701_v20  ;;  %v3703_v24 = vpop.eup %3702  ;;  %v1685_v20 = vld [vmem:[#allocation2 + $0x38] sm:$0x3] }
 0x487   :  { %3706 = vrcp.f32 %v1657_v22  ;;  %v3705_v35 = vpop.eup %3704  ;;  %v1670_v52 = vadd.f32 1.0, %v3703_v24 }
 0x488   :  { %3708 = vrcp.f32 %v1663_v23  ;;  %v1684_v23 = vld [vmem:[#allocation2 + $0x30] sm:$0x3] }
 0x489   :  { %3710 = vrcp.f32 %v1670_v52 }
 0x491   :  { %v3707_v36 = vpop.eup %3706 }
 0x492   :  { %v3709_v50 = vpop.eup %3708  ;;  %v1677_v51 = vmul.f32 %v3707_v36, %v3705_v35 }
 0x493   :  { %v1676_v49 = vmul.f32 %v3709_v50, %v1674_v48  ;;  %v3711_v54 = vpop.eup %3710 }
 0x495   :  { %v4361_v53 = vadd.f32 %v1677_v51, %v1676_v49 }
 0x497   :  { %3712 = vtanh.f32 %v4361_v53 }
 0x4a1   :  { %v3713_v55 = vpop.eup %3712 }
 0x4a2   :  { %v1680_v56 = vmul.f32 %v3713_v55, %v3711_v54  ;;  %v1988_v55 = vrot.slane %v4361_v53, 6 }
 0x4a4   :  { %1681 = vst [vmem:[#allocation3] sm:$0xc0] %v1680_v56  ;;  %v1686_v57 = vpack.c.bf16 %v1680_v56, %v1680_v56 }
 0x4a6   :  { %v1720_v58 = vrot.slane %v1686_v57, 3 }
 0x4a8   :  { %1915 = vmatmul.mubr.bf16.vlgmr.msra.gmra.mrb[20].mxu0 %v1720_v58  ;;  %1956 = vmatmul.mubr.bf16.vlgmr.msra.gmra.mrb[20].mxu1 %v1720_v58 }
 0x4a9   :  { %2194 = vmatpush1.bf16.msra.mxu0 %v4266_v27  ;;  %2235 = vmatpush1.bf16.msra.mxu1 %v4268_v28 }
 0x4aa   :  { %2195 = vmatprep.subr.bf16.mxu0 %v4274_v29  ;;  %2236 = vmatprep.subr.bf16.mxu1 %v4276_v30 }
 0x4ab   :  { %2225 = vmatprep.mubr.bf16.mxu0 %v3930_v0  ;;  %2266 = vmatprep.mubr.bf16.mxu1 %v3930_v0 }
 0x4ad   :  { %2196 = vmatpush1.bf16.msra.mxu0 %v4278_v31  ;;  %2237 = vmatpush1.bf16.msra.mxu1 %v4280_v32 }
 0x4ae   :  { %2197 = vmatprep.subr.bf16.mxu0 %v4286_v33  ;;  %2238 = vmatprep.subr.bf16.mxu1 %v4288_v37 }
 0x4b1   :  { %2198 = vmatpush1.bf16.msra.mxu0 %v4290_v5  ;;  %2239 = vmatpush1.bf16.msra.mxu1 %v4292_v6 }
 0x4b2   :  { %2199 = vmatprep.subr.bf16.mxu0 %v4300_v8  ;;  %2240 = vmatprep.subr.bf16.mxu1 %v4304_v9 }
 0x4b5   :  { %2200 = vmatpush1.bf16.msra.mxu0 %v4298_v7  ;;  %2241 = vmatpush1.bf16.msra.mxu1 %v4302_v10 }
 0x4b6   :  { %2201 = vmatprep.subr.bf16.mxu0 %v4306_v11  ;;  %2242 = vmatprep.subr.bf16.mxu1 %v4309_v12 }
 0x4b9   :  { %2202 = vmatpush1.bf16.msra.mxu0 %v4313_v13  ;;  %2243 = vmatpush1.bf16.msra.mxu1 %v4317_v14 }
 0x4ba   :  { %2203 = vmatprep.subr.bf16.mxu0 %v4319_v15  ;;  %2244 = vmatprep.subr.bf16.mxu1 %v4322_v16 }
 0x4bd   :  { %2204 = vmatpush1.bf16.msra.mxu0 %v4325_v38  ;;  %2245 = vmatpush1.bf16.msra.mxu1 %v4329_v39 }
 0x4be   :  { %2205 = vmatprep.subr.bf16.mxu0 %v4331_v40  ;;  %2246 = vmatprep.subr.bf16.mxu1 %v4334_v41 }
 0x4c1   :  { %2206 = vmatpush1.bf16.msra.mxu0 %v4337_v42  ;;  %2247 = vmatpush1.bf16.msra.mxu1 %v4341_v43 }
 0x4c2   :  { %2207 = vmatprep.subr.bf16.mxu0 %v4343_v44  ;;  %2248 = vmatprep.subr.bf16.mxu1 %v4346_v45 }
 0x4c5   :  { %2208 = vmatpush1.bf16.msra.mxu0 %v4349_v46  ;;  %2249 = vmatpush1.bf16.msra.mxu1 %v4353_v47 }
 0x4c6   :  { %2519 = vmatprep.subr.bf16.mxu0 %v4262_v25  ;;  %2560 = vmatprep.subr.bf16.mxu1 %v4264_v26 }
 0x57b   :  { %v1916_v59 = vpop.f32.mrb[20].mxu0  ;;  %v1957_v60 = vpop.f32.mrb[20].mxu1 }
 0x57c   :  { %v1964_v61 = vadd.f32 %v1916_v59, %v1682_v21  ;;  %v1918_v63 = vpop.f32.mrb[21].mxu0  ;;  %v1959_v1 = vpop.f32.mrb[21].mxu1  ;;  %v1966_v35 = vadd.f32 %v1957_v60, %v1684_v23 }
 0x57d   :  { %v1965_v2 = vadd.f32 %v1918_v63, %v1683_v62  ;;  %v1920_v3 = vpop.f32.mrb[22].mxu0  ;;  %v1961_v4 = vpop.f32.mrb[22].mxu1  ;;  %v1967_v22 = vadd.f32 %v1959_v1, %v1685_v20 }
 0x57e   :  { %v3341_v34 = vmul.f32 -1.442695, %v1964_v61  ;;  %v1921_v17 = vpop.f32.mrb[23].mxu0  ;;  %v1962_v18 = vpop.f32.mrb[23].mxu1 }
 0x57f   :  { %v3342_v19 = vmul.f32 -1.442695, %v1965_v2  ;;  %v3343_v24 = vmul.f32 -1.442695, %v1967_v22  ;;  %v1997_v22 = vld [vmem:[#allocation2 + $0x28] sm:$0xc] }
 0x580   :  { %3714 = vpow2.f32 %v3341_v34  ;;  %v1996_v34 = vld [vmem:[#allocation2 + $0x20] sm:$0xc] }
 0x581   :  { %3716 = vpow2.f32 %v3342_v19 }
 0x582   :  { %3718 = vpow2.f32 %v3343_v24 }
 0x583   :  { %3720 = vtanh.f32 %v1966_v35 }
 0x58a   :  { %v3715_v36 = vpop.eup %3714 }
 0x58b   :  { %v3717_v48 = vpop.eup %3716  ;;  %v1971_v50 = vadd.f32 1.0, %v3715_v36 }
 0x58c   :  { %v1977_v51 = vadd.f32 1.0, %v3717_v48  ;;  %v3719_v52 = vpop.eup %3718 }
 0x58d   :  { %3722 = vrcp.f32 %v1971_v50  ;;  %v3721_v49 = vpop.eup %3720  ;;  %v1984_v58 = vadd.f32 1.0, %v3719_v52  ;;  %v1998_v52 = vld [vmem:[#allocation2 + $0x30] sm:$0xc] }
 0x58e   :  { %3724 = vrcp.f32 %v1977_v51 }
 0x58f   :  { %3726 = vrcp.f32 %v1984_v58 }
 0x597   :  { %v3723_v54 = vpop.eup %3722 }
 0x598   :  { %v3725_v56 = vpop.eup %3724  ;;  %v1991_v57 = vmul.f32 %v3723_v54, %v3721_v49 }
 0x599   :  { %v1990_v21 = vmul.f32 %v3725_v56, %v1988_v55  ;;  %v3727_v60 = vpop.eup %3726 }
 0x59b   :  { %v4399_v59 = vadd.f32 %v1991_v57, %v1990_v21 }
 0x59d   :  { %3728 = vtanh.f32 %v4399_v59 }
 0x5a7   :  { %v3729_v61 = vpop.eup %3728 }
 0x5a8   :  { %v1994_v62 = vmul.f32 %v3729_v61, %v3727_v60 }
 0x5aa   :  { %1995 = vst [vmem:[#allocation3 + $0x8] sm:$0x3] %v1994_v62  ;;  %v2000_v63 = vpack.c.bf16 %v1994_v62, %v1994_v62  ;;  %v2311_v62 = vrot.slane %v4399_v59, 6 }
 0x5ac   :  { %2226 = vmatmul.mubr.bf16.vlgmr.msra.gmra.mrb[24].mxu0 %v2000_v63  ;;  %2267 = vmatmul.mubr.bf16.vlgmr.msra.gmra.mrb[24].mxu1 %v2000_v63 }
 0x5ad   :  { %2520 = vmatpush1.bf16.msra.mxu0 %v4266_v27  ;;  %2561 = vmatpush1.bf16.msra.mxu1 %v4268_v28 }
 0x5ae   :  { %2521 = vmatprep.subr.bf16.mxu0 %v4274_v29  ;;  %2562 = vmatprep.subr.bf16.mxu1 %v4276_v30 }
 0x5af   :  { %2551 = vmatprep.mubr.bf16.mxu0 %v3930_v0  ;;  %2592 = vmatprep.mubr.bf16.mxu1 %v3930_v0 }
 0x5b1   :  { %2522 = vmatpush1.bf16.msra.mxu0 %v4278_v31  ;;  %2563 = vmatpush1.bf16.msra.mxu1 %v4280_v32 }
 0x5b2   :  { %2523 = vmatprep.subr.bf16.mxu0 %v4286_v33  ;;  %2564 = vmatprep.subr.bf16.mxu1 %v4288_v37 }
 0x5b5   :  { %2524 = vmatpush1.bf16.msra.mxu0 %v4290_v5  ;;  %2565 = vmatpush1.bf16.msra.mxu1 %v4292_v6 }
 0x5b6   :  { %2525 = vmatprep.subr.bf16.mxu0 %v4300_v8  ;;  %2566 = vmatprep.subr.bf16.mxu1 %v4304_v9 }
 0x5b9   :  { %2526 = vmatpush1.bf16.msra.mxu0 %v4298_v7  ;;  %2567 = vmatpush1.bf16.msra.mxu1 %v4302_v10 }
 0x5ba   :  { %2527 = vmatprep.subr.bf16.mxu0 %v4306_v11  ;;  %2568 = vmatprep.subr.bf16.mxu1 %v4309_v12 }
 0x5bd   :  { %2528 = vmatpush1.bf16.msra.mxu0 %v4313_v13  ;;  %2569 = vmatpush1.bf16.msra.mxu1 %v4317_v14 }
 0x5be   :  { %2529 = vmatprep.subr.bf16.mxu0 %v4319_v15  ;;  %2570 = vmatprep.subr.bf16.mxu1 %v4322_v16 }
 0x5c1   :  { %2530 = vmatpush1.bf16.msra.mxu0 %v4325_v38  ;;  %2571 = vmatpush1.bf16.msra.mxu1 %v4329_v39 }
 0x5c2   :  { %2531 = vmatprep.subr.bf16.mxu0 %v4331_v40  ;;  %2572 = vmatprep.subr.bf16.mxu1 %v4334_v41 }
 0x5c5   :  { %2532 = vmatpush1.bf16.msra.mxu0 %v4337_v42  ;;  %2573 = vmatpush1.bf16.msra.mxu1 %v4341_v43 }
 0x5c6   :  { %2533 = vmatprep.subr.bf16.mxu0 %v4343_v44  ;;  %2574 = vmatprep.subr.bf16.mxu1 %v4346_v45 }
 0x5c9   :  { %2534 = vmatpush1.bf16.msra.mxu0 %v4349_v46  ;;  %2575 = vmatpush1.bf16.msra.mxu1 %v4353_v47 }
 0x5ca   :  { %2845 = vmatprep.subr.bf16.mxu0 %v4262_v25  ;;  %2886 = vmatprep.subr.bf16.mxu1 %v4264_v26  ;;  %v1999_v25 = vld [vmem:[#allocation2 + $0x38] sm:$0xc] }
 0x67f   :  { %v2227_v53 = vpop.f32.mrb[24].mxu0  ;;  %v2268_v1 = vpop.f32.mrb[24].mxu1 }
 0x680   :  { %v2279_v2 = vrot.slane %v2227_v53, 6  ;;  %v2229_v3 = vpop.f32.mrb[25].mxu0  ;;  %v2270_v4 = vpop.f32.mrb[25].mxu1  ;;  %v2281_v51 = vrot.slane %v2268_v1, 6 }
 0x681   :  { %v2280_v17 = vrot.slane %v2229_v3, 6  ;;  %v2231_v18 = vpop.f32.mrb[26].mxu0  ;;  %v2272_v19 = vpop.f32.mrb[26].mxu1  ;;  %v2282_v50 = vrot.slane %v2270_v4, 6 }
 0x682   :  { %v2287_v20 = vadd.f32 %v2279_v2, %v1996_v34  ;;  %v2232_v23 = vpop.f32.mrb[27].mxu0  ;;  %v2273_v24 = vpop.f32.mrb[27].mxu1  ;;  %v2289_v54 = vadd.f32 %v2281_v51, %v1998_v52  ;;  %v3931_v51 = vmov 0.0   ;;  %v3643_v52 = vld [vmem:[%s4540_s6 + $0x8] sm:$0xff]  }
 0x683   :  { %v2288_v35 = vadd.f32 %v2280_v17, %v1997_v22  ;;  %v2290_v26 = vadd.f32 %v2282_v50, %v1999_v25 }
 0x684   :  { %v3376_v36 = vmul.f32 -1.442695, %v2287_v20 }
 0x685   :  { %v3377_v48 = vmul.f32 -1.442695, %v2288_v35  ;;  %v3378_v49 = vmul.f32 -1.442695, %v2290_v26  ;;  %v3642_v26 = vld [vmem:[%s4540_s6] sm:$0xff]  }
 0x686   :  { %3730 = vpow2.f32 %v3376_v36 }
 0x687   :  { %3732 = vpow2.f32 %v3377_v48 }
 0x688   :  { %3734 = vpow2.f32 %v3378_v49  ;;  %v3644_v49 = vld [vmem:[%s4540_s6 + $0x10] sm:$0xff]  }
 0x689   :  { %3736 = vtanh.f32 %v2289_v54  ;;  %v3645_v54 = vld [vmem:[%s4540_s6 + $0x18] sm:$0xff]  }
 0x690   :  { %v3731_v55 = vpop.eup %3730 }
 0x691   :  { %v3733_v56 = vpop.eup %3732  ;;  %v2294_v57 = vadd.f32 1.0, %v3731_v55  ;;  %v3646_v55 = vld [vmem:[%s4540_s6 + $0x20] sm:$0xff]  }
 0x692   :  { %v2300_v58 = vadd.f32 1.0, %v3733_v56  ;;  %v3735_v21 = vpop.eup %3734  ;;  %v3647_v56 = vld [vmem:[%s4540_s6 + $0x28] sm:$0xff]  }
 0x693   :  { %3738 = vrcp.f32 %v2294_v57  ;;  %v3737_v60 = vpop.eup %3736  ;;  %v2307_v2 = vadd.f32 1.0, %v3735_v21  ;;  %v3648_v57 = vld [vmem:[%s4540_s6 + $0x30] sm:$0xff]  }
 0x694   :  { %3740 = vrcp.f32 %v2300_v58  ;;  %v3649_v58 = vld [vmem:[%s4540_s6 + $0x38] sm:$0xff]  }
 0x695   :  { %3742 = vrcp.f32 %v2307_v2 }
 0x69d   :  { %v3739_v61 = vpop.eup %3738 }
 0x69e   :  { %v3741_v63 = vpop.eup %3740  ;;  %v2314_v53 = vmul.f32 %v3739_v61, %v3737_v60 }
 0x69f   :  { %v2313_v1 = vmul.f32 %v3741_v63, %v2311_v62  ;;  %v3743_v4 = vpop.eup %3742 }
 0x6a1   :  { %v4437_v3 = vadd.f32 %v2314_v53, %v2313_v1  ;;  %v2645_v53 = vld [vmem:[#allocation2 + $0x20] sm:$0xc0] }
 0x6a3   :  { %3744 = vtanh.f32 %v4437_v3 }
 0x6ad   :  { %v3745_v34 = vpop.eup %3744 }
 0x6ae   :  { %v2317_v17 = vmul.f32 %v3745_v34, %v3743_v4  ;;  %v2646_v34 = vld [vmem:[#allocation2 + $0x28] sm:$0xc0] }
 0x6b0   :  { %2318 = vst [vmem:[#allocation3 + $0x8] sm:$0xc] %v2317_v17  ;;  %v2323_v18 = vpack.c.bf16 %v2317_v17, %v2317_v17 }
 0x6b2   :  { %v2357_v19 = vrot.slane %v2323_v18, 1 }
 0x6b4   :  { %2552 = vmatmul.mubr.bf16.vlgmr.msra.gmra.mrb[28].mxu0 %v2357_v19  ;;  %2593 = vmatmul.mubr.bf16.vlgmr.msra.gmra.mrb[28].mxu1 %v2357_v19 }
 0x6b5   :  { %2846 = vmatpush1.bf16.msra.mxu0 %v4266_v27  ;;  %2887 = vmatpush1.bf16.msra.mxu1 %v4268_v28 }
 0x6b6   :  { %2847 = vmatprep.subr.bf16.mxu0 %v4274_v29  ;;  %2888 = vmatprep.subr.bf16.mxu1 %v4276_v30 }
 0x6b7   :  { %2877 = vmatprep.mubr.bf16.mxu0 %v3930_v0  ;;  %2918 = vmatprep.mubr.bf16.mxu1 %v3930_v0 }
 0x6b9   :  { %2848 = vmatpush1.bf16.msra.mxu0 %v4278_v31  ;;  %2889 = vmatpush1.bf16.msra.mxu1 %v4280_v32  ;;  %v2319_v31 = vld [vmem:[#allocation2 + $0x20] sm:$0x30] }
 0x6ba   :  { %2849 = vmatprep.subr.bf16.mxu0 %v4286_v33  ;;  %2890 = vmatprep.subr.bf16.mxu1 %v4288_v37 }
 0x6bd   :  { %2850 = vmatpush1.bf16.msra.mxu0 %v4290_v5  ;;  %2891 = vmatpush1.bf16.msra.mxu1 %v4292_v6  ;;  %v2320_v6 = vld [vmem:[#allocation2 + $0x28] sm:$0x30] }
 0x6be   :  { %2851 = vmatprep.subr.bf16.mxu0 %v4300_v8  ;;  %2892 = vmatprep.subr.bf16.mxu1 %v4304_v9 }
 0x6c1   :  { %2852 = vmatpush1.bf16.msra.mxu0 %v4298_v7  ;;  %2893 = vmatpush1.bf16.msra.mxu1 %v4302_v10 }
 0x6c2   :  { %2853 = vmatprep.subr.bf16.mxu0 %v4306_v11  ;;  %2894 = vmatprep.subr.bf16.mxu1 %v4309_v12 }
 0x6c5   :  { %2854 = vmatpush1.bf16.msra.mxu0 %v4313_v13  ;;  %2895 = vmatpush1.bf16.msra.mxu1 %v4317_v14  ;;  %v2322_v13 = vld [vmem:[#allocation2 + $0x38] sm:$0x30] }
 0x6c6   :  { %2855 = vmatprep.subr.bf16.mxu0 %v4319_v15  ;;  %2896 = vmatprep.subr.bf16.mxu1 %v4322_v16  ;;  %v2321_v16 = vld [vmem:[#allocation2 + $0x30] sm:$0x30] }
 0x6c9   :  { %2856 = vmatpush1.bf16.msra.mxu0 %v4325_v38  ;;  %2897 = vmatpush1.bf16.msra.mxu1 %v4329_v39 }
 0x6ca   :  { %2857 = vmatprep.subr.bf16.mxu0 %v4331_v40  ;;  %2898 = vmatprep.subr.bf16.mxu1 %v4334_v41 }
 0x6cd   :  { %2858 = vmatpush1.bf16.msra.mxu0 %v4337_v42  ;;  %2899 = vmatpush1.bf16.msra.mxu1 %v4341_v43 }
 0x6ce   :  { %2859 = vmatprep.subr.bf16.mxu0 %v4343_v44  ;;  %2900 = vmatprep.subr.bf16.mxu1 %v4346_v45 }
 0x6d1   :  { %2860 = vmatpush1.bf16.msra.mxu0 %v4349_v46  ;;  %2901 = vmatpush1.bf16.msra.mxu1 %v4353_v47  ;;  %v2637_v47 = vrot.slane %v4437_v3, 6 }
 0x6d2   :  { %3467 = vmatprep.subr.bf16.mxu0 %v3931_v51 }
 0x787   :  { %v2553_v0 = vpop.f32.mrb[28].mxu0  ;;  %v2594_v27 = vpop.f32.mrb[28].mxu1 }
 0x788   :  { %v2605_v28 = vrot.slane %v2553_v0, 4  ;;  %v2555_v29 = vpop.f32.mrb[29].mxu0  ;;  %v2596_v30 = vpop.f32.mrb[29].mxu1  ;;  %v2607_v15 = vrot.slane %v2594_v27, 4 }
 0x789   :  { %v2606_v32 = vrot.slane %v2555_v29, 4  ;;  %v2557_v33 = vpop.f32.mrb[30].mxu0  ;;  %v2598_v37 = vpop.f32.mrb[30].mxu1  ;;  %v2608_v12 = vrot.slane %v2596_v30, 4  ;;  %v2648_v29 = vld [vmem:[#allocation2 + $0x38] sm:$0xc0] }
 0x78a   :  { %v2613_v5 = vadd.f32 %v2605_v28, %v2319_v31  ;;  %v2558_v7 = vpop.f32.mrb[31].mxu0  ;;  %v2599_v8 = vpop.f32.mrb[31].mxu1  ;;  %v2615_v39 = vadd.f32 %v2607_v15, %v2321_v16 }
 0x78b   :  { %v2614_v10 = vadd.f32 %v2606_v32, %v2320_v6  ;;  %v2616_v14 = vadd.f32 %v2608_v12, %v2322_v13  ;;  %v2647_v32 = vld [vmem:[#allocation2 + $0x30] sm:$0xc0] }
 0x78c   :  { %v3411_v9 = vmul.f32 -1.442695, %v2613_v5 }
 0x78d   :  { %v3412_v11 = vmul.f32 -1.442695, %v2614_v10  ;;  %v3413_v38 = vmul.f32 -1.442695, %v2616_v14 }
 0x78e   :  { %3746 = vpow2.f32 %v3411_v9 }
 0x78f   :  { %3748 = vpow2.f32 %v3412_v11 }
 0x790   :  { %3750 = vpow2.f32 %v3413_v38 }
 0x791   :  { %3752 = vtanh.f32 %v2615_v39 }
 0x798   :  { %v3747_v40 = vpop.eup %3746 }
 0x799   :  { %v3749_v41 = vpop.eup %3748  ;;  %v2620_v42 = vadd.f32 1.0, %v3747_v40 }
 0x79a   :  { %v2626_v43 = vadd.f32 1.0, %v3749_v41  ;;  %v3751_v44 = vpop.eup %3750 }
 0x79b   :  { %3754 = vrcp.f32 %v2620_v42  ;;  %v3753_v45 = vpop.eup %3752  ;;  %v2633_v22 = vadd.f32 1.0, %v3751_v44  ;;  %v2973_v42 = vld [vmem:[#allocation3] sm:$0xff] }
 0x79c   :  { %3756 = vrcp.f32 %v2626_v43 }
 0x79d   :  { %3758 = vrcp.f32 %v2633_v22 }
 0x7a5   :  { %v3755_v46 = vpop.eup %3754 }
 0x7a6   :  { %v3757_v59 = vpop.eup %3756  ;;  %v2640_v20 = vmul.f32 %v3755_v46, %v3753_v45  ;;  %v3449_v45 = vld [vmem:[%s4541_s7] ss:$0 sm:$0xff] }
 0x7a7   :  { %v2639_v23 = vmul.f32 %v3757_v59, %v2637_v47  ;;  %v3759_v35 = vpop.eup %3758 }
 0x7a9   :  { %v4473_v24 = vadd.f32 %v2640_v20, %v2639_v23 }
 0x7ab   :  { %3760 = vtanh.f32 %v4473_v24  ;;  %v2963_v12 = vrot.slane %v4473_v24, 6 }
 0x7b5   :  { %v3761_v36 = vpop.eup %3760 }
 0x7b6   :  { %v2643_v48 = vmul.f32 %v3761_v36, %v3759_v35 }
 0x7b8   :  { %2644 = vst [vmem:[#allocation3 + $0x8] sm:$0x30] %v2643_v48  ;;  %v2649_v50 = vpack.c.bf16 %v2643_v48, %v2643_v48 }
 0x7ba   :  { %v2683_v25 = vrot.slane %v2649_v50, 2 }
 0x7bc   :  { %2878 = vmatmul.mubr.bf16.vlgmr.msra.gmra.mrb[32].mxu0 %v2683_v25  ;;  %2919 = vmatmul.mubr.bf16.vlgmr.msra.gmra.mrb[32].mxu1 %v2683_v25 }
 0x7bd   :  { %3468 = vmatpush3.bf16.msra.mxu0 %v3642_v26  ;;  %3483 = vmatprep.mubr.msk.bf16.mxu0 %vm3932_vm0, %v3931_v51 }
 0x7be   :  { %3469 = vmatprep.subr.bf16.mxu0 %v3931_v51 }
 0x7c1   :  { %3470 = vmatpush3.bf16.msra.mxu0 %v3643_v52 }
 0x7c2   :  { %3471 = vmatprep.subr.bf16.mxu0 %v3931_v51 }
 0x7c5   :  { %3472 = vmatpush3.bf16.msra.mxu0 %v3644_v49 }
 0x7c6   :  { %3473 = vmatprep.subr.bf16.mxu0 %v3931_v51 }
 0x7c9   :  { %3474 = vmatpush3.bf16.msra.mxu0 %v3645_v54 }
 0x7ca   :  { %3475 = vmatprep.subr.bf16.mxu0 %v3931_v51 }
 0x7cd   :  { %3476 = vmatpush3.bf16.msra.mxu0 %v3646_v55 }
 0x7ce   :  { %3477 = vmatprep.subr.bf16.mxu0 %v3931_v51 }
 0x7d1   :  { %3478 = vmatpush3.bf16.msra.mxu0 %v3647_v56 }
 0x7d2   :  { %3479 = vmatprep.subr.bf16.mxu0 %v3931_v51 }
 0x7d5   :  { %3480 = vmatpush3.bf16.msra.mxu0 %v3648_v57 }
 0x7d6   :  { %3481 = vmatprep.subr.bf16.mxu0 %v3931_v51 }
 0x7d9   :  { %3482 = vmatpush3.bf16.msra.mxu0 %v3649_v58 }
 0x88f   :  { %v2879_v21 = vpop.f32.mrb[32].mxu0  ;;  %v2920_v60 = vpop.f32.mrb[32].mxu1 }
 0x890   :  { %v2931_v61 = vrot.slane %v2879_v21, 2  ;;  %v2881_v62 = vpop.f32.mrb[33].mxu0  ;;  %v2922_v63 = vpop.f32.mrb[33].mxu1  ;;  %v2933_v31 = vrot.slane %v2920_v60, 2 }
 0x891   :  { %v2932_v2 = vrot.slane %v2881_v62, 2  ;;  %v2883_v1 = vpop.f32.mrb[34].mxu0  ;;  %v2924_v3 = vpop.f32.mrb[34].mxu1  ;;  %v2934_v28 = vrot.slane %v2922_v63, 2 }
 0x892   :  { %v2939_v4 = vadd.f32 %v2931_v61, %v2645_v53  ;;  %v2884_v17 = vpop.f32.mrb[35].mxu0  ;;  %v2925_v18 = vpop.f32.mrb[35].mxu1  ;;  %v2941_v37 = vadd.f32 %v2933_v31, %v2647_v32 }
 0x893   :  { %v2940_v19 = vadd.f32 %v2932_v2, %v2646_v34  ;;  %v2942_v30 = vadd.f32 %v2934_v28, %v2648_v29 }
 0x894   :  { %v3446_v0 = vmul.f32 -1.442695, %v2939_v4 }
 0x895   :  { %v3447_v27 = vmul.f32 -1.442695, %v2940_v19  ;;  %v3448_v33 = vmul.f32 -1.442695, %v2942_v30 }
 0x896   :  { %3762 = vpow2.f32 %v3446_v0 }
 0x897   :  { %3764 = vpow2.f32 %v3447_v27 }
 0x898   :  { %3766 = vpow2.f32 %v3448_v33 }
 0x899   :  { %3768 = vtanh.f32 %v2941_v37 }
 0x8a0   :  { %v3763_v5 = vpop.eup %3762 }
 0x8a1   :  { %v3765_v6 = vpop.eup %3764  ;;  %v2946_v7 = vadd.f32 1.0, %v3763_v5 }
 0x8a2   :  { %v2952_v8 = vadd.f32 1.0, %v3765_v6  ;;  %v3767_v10 = vpop.eup %3766 }
 0x8a3   :  { %3770 = vrcp.f32 %v2946_v7  ;;  %v3769_v9 = vpop.eup %3768  ;;  %v2959_v15 = vadd.f32 1.0, %v3767_v10 }
 0x8a4   :  { %3772 = vrcp.f32 %v2952_v8 }
 0x8a5   :  { %3774 = vrcp.f32 %v2959_v15 }
 0x8ad   :  { %v3771_v11 = vpop.eup %3770 }
 0x8ae   :  { %v3773_v13 = vpop.eup %3772  ;;  %v2966_v14 = vmul.f32 %v3771_v11, %v3769_v9 }
 0x8af   :  { %v2965_v16 = vmul.f32 %v3773_v13, %v2963_v12  ;;  %v3775_v39 = vpop.eup %3774 }
 0x8b1   :  { %v2967_v38 = vadd.f32 %v2966_v14, %v2965_v16 }
 0x8b3   :  { %3776 = vtanh.f32 %v2967_v38  ;;  %2972 = vst [vmem:[#allocation13 - $0x6] sm:$0xc0] %v2967_v38 }
 0x8bd   :  { %v3777_v40 = vpop.eup %3776 }
 0x8be   :  { %v2969_v41 = vmul.f32 %v3777_v40, %v3775_v39 }
 0x8c0   :  { %2970 = vst [vmem:[#allocation3 + $0x8] sm:$0xc0] %v2969_v41  ;;  %2971 = vst [vmem:[#allocation12 - $0x6] sm:$0xc0] %v2969_v41 }
 0x8c7   :  { %v2974_v43 = vld [vmem:[#allocation3 + $0x8] sm:$0xff] }
 0x8c8   :  { %v2975_v44 = vpack.c.bf16 %v2974_v43, %v2973_v42 }
 0x8ca   :  { %3484 = vmatmul.mubr.bf16.vlgmr.msra.gmra.mrb[36].mxu0 %v2975_v44 }
 0x99d   :  { %v3081_v46 = vpop.f32.mrb[36].mxu0 }
 0x99e   :  { %v3082_v47 = vadd.f32 %v3449_v45, %v3081_v46  ;;  %v3485_v59 = vpop.f32.mrb[37].mxu0 }
 0x99f   :  { %v3084_v20 = vpop.f32.mrb[38].mxu0 }
 0x9a0   :  { %v3085_v22 = vadd.f32 %v3449_v45, %v3084_v20  ;;  %v3486_v23 = vpop.f32.mrb[39].mxu0  ;;  %v3088_v24 = vmul.f32 %v3082_v47, %v3082_v47 }
 0x9a2   :  { %3090 = vadd.xlane.f32.xlu0 %v3088_v24  ;;  %v3089_v35 = vmul.f32 %v3085_v22, %v3085_v22 }
 0x9a6   :  { %3092 = vadd.xlane.f32.xlu0 %v3089_v35 }
 0x9a7   :  { %3881 = shalt.err (!%p3878_p8)
}
 0x9a8   :  { %s3882_s22 = scalar_lea.hbm %s4543_s9, 32 }
 0x9a9   :  { %p3883_p9 = scmp.ne.s32.totalorder %s4543_s9, %s3882_s22  ;;  %p3886_p10 = scmp.lt.u32.totalorder %s3882_s22, %s4543_s9 }
 0x9ab   :  { %p3888_p11 = pnand %p3886_p10, %p3883_p9 }
 0x9ad   :  { %3891 = shalt.err (!%p3888_p11)
}
 0x9ae   :  { %3113 = dma.vmem_to_hbm [thread:$0]  %s3111_s3, 32, %s4543_s9, [#allocation6]  }
 0x9af   :  { %s3892_s1 = scalar_lea.vmem %s3121_s4, 32  ;;  %p3897_p13 = scmp.lt.s32.totalorder %s3121_s4, %s3121_s4 }
 0x9b0   :  { %p3893_p12 = scmp.ne.s32.totalorder %s3121_s4, %s3892_s1  ;;  %p3898_p0 = scmp.lt.s32.totalorder %s3892_s1, %s3892_s1 }
 0x9b2   :  { %p3899_p1 = por %p3898_p0, %p3897_p13 }
 0x9b4   :  { %p3900_p2 = pnand %p3899_p1, %p3893_p12 }
 0x9b6   :  { %3903 = shalt.err (!%p3900_p2)
}
 0x9b7   :  { %s3904_s28 = scalar_lea.hbm %s4544_s10, 32 }
 0x9b8   :  { %p3905_p3 = scmp.ne.s32.totalorder %s4544_s10, %s3904_s28  ;;  %p3908_p4 = scmp.lt.u32.totalorder %s3904_s28, %s4544_s10 }
 0x9ba   :  { %p3910_p5 = pnand %p3908_p4, %p3905_p3 }
 0x9bc   :  { %3913 = shalt.err (!%p3910_p5)
}
 0x9bd   :  { %3123 = dma.vmem_to_hbm [thread:$0]  %s3121_s4, 32, %s4544_s10, [#allocation14]  }
 0xa2f   :  { %v3091_v36 = vpop.xlane.xlu0 %3090 }
 0xa30   :  { %v3094_v48 = vmax.f32 %v3091_v36, 1e-24 }
 0xa32   :  { %3778 = vrsqrt.f32 %v3094_v48 }
 0xa33   :  { %v3093_v50 = vpop.xlane.xlu0 %3092 }
 0xa34   :  { %v3095_v25 = vmax.f32 %v3093_v50, 1e-24 }
 0xa36   :  { %3780 = vrsqrt.f32 %v3095_v25 }
 0xa3c   :  { %v3779_v26 = vpop.eup %3778 }
 0xa3d   :  { %v3098_v51 = vmul.f32 %v3779_v26, %v3082_v47 }
 0xa3f   :  { %3100 = vst [vmem:[%s4542_s8] sm:$0xff] %v3098_v51 }
 0xa40   :  { %v3781_v52 = vpop.eup %3780 }
 0xa41   :  { %v3099_v49 = vmul.f32 %v3781_v52, %v3085_v22 }
 0xa43   :  { %3101 = vst [vmem:[%s4542_s8 + $0x8] sm:$0xff] %v3099_v49 }
 0xa44   :  { %3920 = dma.done.wait [#allocation6], 32  }
 0xa45   :  { %3921 = vsyncadd [#allocation6], 4294967264 }
 0xa46   :  { %3922 = dma.done.wait [#allocation14], 32  }
 0xa47   :  { %3923 = vsyncadd [#allocation14], 4294967264 }
 0xa48   :  { %3132 = vsyncpa [#allocation5], 1 }
 0xa49   :  { %3133 = vsyncpa [#allocation8], 1 }
 0xa4a   :  { %3134 = vsyncpa [#allocation11], 1 }
 0xa4b   :  { %3135 = vsyncpa [#allocation6], 1 }
 0xa4c   :  { %3136 = vsyncpa [#allocation14], 1 }

</bundles_post_ra>
